<compile_context>
chip_gen: v7x
topology: tpu7x:2x2x1
jax: 0.10.0
libtpu: 0.0.40
codegen_flags: <defaults>
</compile_context>

<pallas_src>
import numpy as np
import jax
import jax.numpy as jnp
from jax import lax
from jax.experimental import pallas as pl
from jax.experimental.pallas import tpu as pltpu

DIM = 32           # opts.dim
N_MLP_LAYERS = 2   # opts.n_mlp_layers (hidden = dim, ReLU activation)
N_ITERATIONS = 3   # opts.n_iterations
ROW_MULT = 16      # row padding multiple (bf16 sublane packing)


# -----------------------------------------------------------------------------
# Pallas kernel: all GGNN_VCG message-passing iterations (grid axis = iteration)
# -----------------------------------------------------------------------------
def _ggnn_kernel(v0_ref, c0_ref,
                 a_p_ref, a_n_ref, a_pt_ref, a_nt_ref,
                 v_w1_ref, v_b1_ref, c_w1_ref, c_b1_ref,
                 v_w2_ref, v_b2_ref, c_w2_ref, c_b2_ref,
                 gru_wi_ref, gru_wh_ref, gru_bi_ref, gru_bh_ref,
                 v_out_ref, c_out_ref,
                 v_state, c_state):
    f32 = jnp.float32
    bf16 = jnp.bfloat16
    D = DIM

    @pl.when(pl.program_id(0) == 0)
    def _():
        v_state[...] = v0_ref[...]
        c_state[...] = c0_ref[...]

    v_emb = v_state[...]            # (V, D) f32
    c_emb = c_state[...]            # (C, D) f32

    # ---- message MLPs: both (p|n) nets per source fused; 64-lane-wide results ----
    def msg_feat(emb, w1_ref, b1_ref, w2_ref, b2_ref):
        h = jnp.maximum(
            jnp.dot(emb.astype(bf16), w1_ref[...], preferred_element_type=f32)
            + b1_ref[...], 0.0)                                                  # (rows, 2D)
        feat = jnp.dot(h.astype(bf16), w2_ref[...], preferred_element_type=f32) + b2_ref[...]
        return feat.astype(bf16)    # (rows, 2D): [:, :D] = positive net, [:, D:] = negative net

    feat_v = msg_feat(v_emb, v_w1_ref, v_b1_ref, v_w2_ref, v_b2_ref)   # (V, 2D) bf16
    feat_c = msg_feat(c_emb, c_w1_ref, c_b1_ref, c_w2_ref, c_b2_ref)   # (C, 2D) bf16

    # ---- aggregation: scatter_sum over literal edges == dense 0/1 incidence matmul ----
    # Feed the full 64-lane feature slab to both incidence dots (same MXU pass count as
    # a 32-lane output) and recombine the valid halves with a lane select (no lane-slice
    # or concat copies).  Result lanes: [:, :D] = positive aggr, [:, D:] = negative aggr.
    def aggregate(a_p, a_n, feat):
        p_full = jnp.dot(a_p, feat, preferred_element_type=f32)        # (rows, 2D) f32
        n_full = jnp.dot(a_n, feat, preferred_element_type=f32)
        lane = lax.broadcasted_iota(jnp.int32, p_full.shape, 1)
        return jnp.where(lane < D, p_full, n_full)                     # (rows, 2D) f32

    x_c = aggregate(a_p_ref[...], a_n_ref[...], feat_v)                # (C, 2D) v->c messages
    x_v = aggregate(a_pt_ref[...], a_nt_ref[...], feat_c)              # (V, 2D) c->v messages

    # ---- GRU cells: input halves AND gates (r,z,n) fused -> one K=64 x 96-lane matmul ----
    def gru(u, x, h):
        gi = (jnp.dot(x.astype(bf16), gru_wi_ref[u], preferred_element_type=f32)
              + gru_bi_ref[u])                                          # (rows, 3D) f32
        gh = (jnp.dot(h.astype(bf16), gru_wh_ref[u], preferred_element_type=f32)
              + gru_bh_ref[u])                                          # (rows, 3D) f32
        r = jax.nn.sigmoid(gi[:, :D] + gh[:, :D])
        z = jax.nn.sigmoid(gi[:, D:2 * D] + gh[:, D:2 * D])
        n = jnp.tanh(gi[:, 2 * D:] + r * gh[:, 2 * D:])
        return (1.0 - z) * n + z * h

    # clause update first, then variable update; both use pre-update message features,
    # exactly matching the PyTorch forward ordering.
    new_c = gru(0, x_c, c_emb)
    new_v = gru(1, x_v, v_emb)

    c_state[...] = new_c
    v_state[...] = new_v
    # TODO(synk): the module returns every per-iteration embedding, so these 32-lane
    # (masked) stores cannot be gated to the last iteration without changing semantics.
    c_out_ref[...] = new_c
    v_out_ref[...] = new_v


# -----------------------------------------------------------------------------
# Wrapper
# -----------------------------------------------------------------------------
def _pad_rows(x, mult):
    pad = (-x.shape[0]) % mult
    if pad:
        x = jnp.pad(x, ((0, pad),) + ((0, 0),) * (x.ndim - 1))
    return x


def _blockdiag(a, b):
    za = jnp.zeros((a.shape[0], b.shape[1]), a.dtype)
    zb = jnp.zeros((b.shape[0], a.shape[1]), b.dtype)
    return jnp.concatenate(
        [jnp.concatenate([a, za], axis=1), jnp.concatenate([zb, b], axis=1)], axis=0)


def ggnn_vcg_forward(params, v_size, c_size, v_edge_index, c_edge_index,
                     p_edge_index, n_edge_index, v_emb, c_emb,
                     n_iterations=N_ITERATIONS):
    # TODO(synk): the irregular per-edge gather/scatter_sum has no clean small-shape Pallas
    # equivalent on TPU; it is converted to dense 0/1 incidence matmuls (built once here).
    # bf16 is exact for these small integer counts and halves incidence DMA + VMEM.
    D = DIM
    bf16 = jnp.bfloat16
    v_pad = -(-v_size // ROW_MULT) * ROW_MULT
    c_pad = -(-c_size // ROW_MULT) * ROW_MULT

    a_p = jnp.zeros((c_pad, v_pad), jnp.float32).at[
        c_edge_index[p_edge_index], v_edge_index[p_edge_index]].add(1.0)
    a_n = jnp.zeros((c_pad, v_pad), jnp.float32).at[
        c_edge_index[n_edge_index], v_edge_index[n_edge_index]].add(1.0)
    a_p_bf, a_n_bf = a_p.astype(bf16), a_n.astype(bf16)
    # pre-transposed resident copies: c->v aggregation becomes a plain row-major dot so
    # Mosaic never re-transposes the (C,V) incidence inside the iteration loop.
    # TODO(synk): on v7x (64 MiB VMEM) prefer single-buffered constants / fp8 incidence /
    # tiled block-sparse aggregation instead of duplicating the incidence for large CNFs.
    a_pt_bf, a_nt_bf = a_p.T.astype(bf16), a_n.T.astype(bf16)

    v0 = _pad_rows(v_emb, ROW_MULT)
    c0 = _pad_rows(c_emb, ROW_MULT)

    # fused first MLP layers (p|n nets concatenated along the output dim), bf16 weights
    v_w1 = jnp.concatenate([params['mlp_w1'][0], params['mlp_w1'][1]], axis=1).astype(bf16)
    v_b1 = jnp.concatenate([params['mlp_b1'][0], params['mlp_b1'][1]], axis=1)   # (1, 2D) f32
    c_w1 = jnp.concatenate([params['mlp_w1'][2], params['mlp_w1'][3]], axis=1).astype(bf16)
    c_b1 = jnp.concatenate([params['mlp_b1'][2], params['mlp_b1'][3]], axis=1)
    # fused second MLP layers: block-diagonal (2D, 2D) weights
    v_w2 = _blockdiag(params['mlp_w2'][0], params['mlp_w2'][1]).astype(bf16)
    v_b2 = jnp.concatenate([params['mlp_b2'][0], params['mlp_b2'][1]], axis=1)
    c_w2 = _blockdiag(params['mlp_w2'][2], params['mlp_w2'][3]).astype(bf16)
    c_b2 = jnp.concatenate([params['mlp_b2'][2], params['mlp_b2'][3]], axis=1)

    # GRU fusion: input halves (p|n aggr) along the contraction dim AND gates (r|z|n)
    # along the output dim -> (2, 2D, 3D); hidden weight -> (2, D, 3D)
    gru_wi = params['gru_wi']                                                    # (2,3,2,D,D)
    gru_wi_cat = jnp.transpose(gru_wi, (0, 2, 3, 1, 4)).reshape(2, 2 * D, 3 * D).astype(bf16)
    gru_wh = jnp.transpose(params['gru_wh'], (0, 2, 1, 3)).reshape(2, D, 3 * D).astype(bf16)
    gru_bi = params['gru_bi'].reshape(2, 1, 3 * D)                               # f32
    gru_bh = params['gru_bh'].reshape(2, 1, 3 * D)                               # f32

    inputs = (v0, c0, a_p_bf, a_n_bf, a_pt_bf, a_nt_bf,
              v_w1, v_b1, c_w1, c_b1, v_w2, v_b2, c_w2, c_b2,
              gru_wi_cat, gru_wh, gru_bi, gru_bh)

    def const_spec(x):
        nd = x.ndim
        # full-array block, constant index map -> DMA'd once, resident across iterations
        return pl.BlockSpec(x.shape, lambda i, _nd=nd: (0,) * _nd)

    in_specs = [const_spec(x) for x in inputs]
    out_specs = (pl.BlockSpec((None, v_pad, D), lambda i: (i, 0, 0)),
                 pl.BlockSpec((None, c_pad, D), lambda i: (i, 0, 0)))

    call = pl.pallas_call(
        _ggnn_kernel,
        grid=(n_iterations,),
        in_specs=in_specs,
        out_specs=out_specs,
        out_shape=(jax.ShapeDtypeStruct((n_iterations, v_pad, D), jnp.float32),
                   jax.ShapeDtypeStruct((n_iterations, c_pad, D), jnp.float32)),
        scratch_shapes=[pltpu.VMEM((v_pad, D), jnp.float32),
                        pltpu.VMEM((c_pad, D), jnp.float32)],
        compiler_params=pltpu.CompilerParams(
            dimension_semantics=("arbitrary",),
            vmem_limit_bytes=64 * 1024 * 1024),
    )
    v_stack, c_stack = call(*inputs)

    v_embs = [v_emb] + [v_stack[i, :v_size] for i in range(n_iterations)]
    c_embs = [c_emb] + [c_stack[i, :c_size] for i in range(n_iterations)]
    return v_embs, c_embs


# -----------------------------------------------------------------------------
# Pure-JAX reference (mirrors the PyTorch forward with gather + scatter_sum)
# -----------------------------------------------------------------------------
def ggnn_vcg_reference(params, v_size, c_size, v_edge_index, c_edge_index,
                       p_edge_index, n_edge_index, v_emb, c_emb,
                       n_iterations=N_ITERATIONS):
    def mlp(x, i):
        h = jnp.maximum(x @ params['mlp_w1'][i] + params['mlp_b1'][i, 0], 0.0)
        return h @ params['mlp_w2'][i] + params['mlp_b2'][i, 0]

    def gru(u, xp, xn, h):
        def gate(g):
            gi = (xp @ params['gru_wi'][u, g, 0] + xn @ params['gru_wi'][u, g, 1]
                  + params['gru_bi'][u, g, 0])
            gh = h @ params['gru_wh'][u, g] + params['gru_bh'][u, g, 0]
            return gi, gh
        gir, ghr = gate(0)
        giz, ghz = gate(1)
        gin, ghn = gate(2)
        r = jax.nn.sigmoid(gir + ghr)
        z = jax.nn.sigmoid(giz + ghz)
        n = jnp.tanh(gin + r * ghn)
        return (1.0 - z) * n + z * h

    v_embs = [v_emb]
    c_embs = [c_emb]
    for _ in range(n_iterations):
        p_v2c = mlp(v_emb, 0)[v_edge_index[p_edge_index]]
        p_v2c_aggr = jax.ops.segment_sum(p_v2c, c_edge_index[p_edge_index], num_segments=c_size)
        n_v2c = mlp(v_emb, 1)[v_edge_index[n_edge_index]]
        n_v2c_aggr = jax.ops.segment_sum(n_v2c, c_edge_index[n_edge_index], num_segments=c_size)
        p_c2v = mlp(c_emb, 2)[c_edge_index[p_edge_index]]
        p_c2v_aggr = jax.ops.segment_sum(p_c2v, v_edge_index[p_edge_index], num_segments=v_size)
        n_c2v = mlp(c_emb, 3)[c_edge_index[n_edge_index]]
        n_c2v_aggr = jax.ops.segment_sum(n_c2v, v_edge_index[n_edge_index], num_segments=v_size)
        c_emb = gru(0, p_v2c_aggr, n_v2c_aggr, c_emb)
        c_embs.append(c_emb)
        v_emb = gru(1, p_c2v_aggr, n_c2v_aggr, v_emb)
        v_embs.append(v_emb)
    return v_embs, c_embs


# -----------------------------------------------------------------------------
# Deterministic parameter init
# -----------------------------------------------------------------------------
def init_params(key):
    ks = jax.random.split(key, 8)
    u = lambda k, shape: jax.random.uniform(k, shape, jnp.float32, -0.1, 0.1)
    return dict(
        # 4 MLPs (p_v2c, n_v2c, p_c2v, n_c2v), each: Linear(D,D) -> ReLU -> Linear(D,D)
        mlp_w1=u(ks[0], (4, DIM, DIM)),
        mlp_b1=u(ks[1], (4, 1, DIM)),
        mlp_w2=u(ks[2], (4, DIM, DIM)),
        mlp_b2=u(ks[3], (4, 1, DIM)),
        # 2 GRUCells (c_update, v_update); input weight split per gate (r,z,n) and
        # per input half (positive-aggr / negative-aggr), equivalent to GRUCell(2D, D).
        gru_wi=u(ks[4], (2, 3, 2, DIM, DIM)),
        gru_wh=u(ks[5], (2, 3, DIM, DIM)),
        gru_bi=u(ks[6], (2, 3, 1, DIM)),
        gru_bh=u(ks[7], (2, 3, 1, DIM)),
    )


if __name__ == "__main__":
    key = jax.random.PRNGKey(0)
    k_param, k_v, k_c = jax.random.split(key, 3)

    V, C, LITS_PER_CLAUSE = 32, 16, 3
    E = C * LITS_PER_CLAUSE

    params = init_params(k_param)

    # deterministic random VCG: each clause gets 3 literals with random variable / polarity
    rng = np.random.RandomState(0)
    v_edge_index = jnp.asarray(rng.randint(0, V, size=E), jnp.int32)
    c_edge_index = jnp.asarray(np.repeat(np.arange(C), LITS_PER_CLAUSE), jnp.int32)
    pol = rng.rand(E) < 0.5
    p_edge_index = jnp.asarray(np.nonzero(pol)[0], jnp.int32)
    n_edge_index = jnp.asarray(np.nonzero(~pol)[0], jnp.int32)

    v_emb = jax.random.normal(k_v, (V, DIM), jnp.float32)
    c_emb = jax.random.normal(k_c, (C, DIM), jnp.float32)

    v_embs, c_embs = ggnn_vcg_forward(params, V, C, v_edge_index, c_edge_index,
                                      p_edge_index, n_edge_index, v_emb, c_emb)
    jax.block_until_ready(v_embs[-1])
    jax.block_until_ready(c_embs[-1])

    v_ref, c_ref = ggnn_vcg_reference(params, V, C, v_edge_index, c_edge_index,
                                      p_edge_index, n_edge_index, v_emb, c_emb)
    # tolerance covers bf16 matmul operands (f32 accumulation and f32 gate math kept)
    # compounding through the GRU recurrence over 3 iterations.
    for a, b in zip(v_embs, v_ref):
        assert jnp.allclose(a, b, atol=5e-2, rtol=5e-2), "variable embedding mismatch"
    for a, b in zip(c_embs, c_ref):
        assert jnp.allclose(a, b, atol=5e-2, rtol=5e-2), "clause embedding mismatch"

    print("KERNEL_OK")
</pallas_src>

<mosaic_0001>
module attributes {stable_mosaic.version = 11 : i64} {
  func.func @_ggnn_kernel(%arg0: i32, %arg1: memref<32x32xf32, #tpu.memory_space<vmem>>, %arg2: memref<16x32xf32, #tpu.memory_space<vmem>>, %arg3: memref<16x32xbf16, #tpu.memory_space<vmem>>, %arg4: memref<16x32xbf16, #tpu.memory_space<vmem>>, %arg5: memref<32x16xbf16, #tpu.memory_space<vmem>>, %arg6: memref<32x16xbf16, #tpu.memory_space<vmem>>, %arg7: memref<32x64xbf16, #tpu.memory_space<vmem>>, %arg8: memref<1x64xf32, #tpu.memory_space<vmem>>, %arg9: memref<32x64xbf16, #tpu.memory_space<vmem>>, %arg10: memref<1x64xf32, #tpu.memory_space<vmem>>, %arg11: memref<64x64xbf16, #tpu.memory_space<vmem>>, %arg12: memref<1x64xf32, #tpu.memory_space<vmem>>, %arg13: memref<64x64xbf16, #tpu.memory_space<vmem>>, %arg14: memref<1x64xf32, #tpu.memory_space<vmem>>, %arg15: memref<2x64x96xbf16, #tpu.memory_space<vmem>>, %arg16: memref<2x32x96xbf16, #tpu.memory_space<vmem>>, %arg17: memref<2x1x96xf32, #tpu.memory_space<vmem>>, %arg18: memref<2x1x96xf32, #tpu.memory_space<vmem>>, %arg19: memref<1x32x32xf32, #tpu.memory_space<vmem>>, %arg20: memref<1x16x32xf32, #tpu.memory_space<vmem>>, %arg21: memref<32x32xf32, #tpu.memory_space<vmem>>, %arg22: memref<16x32xf32, #tpu.memory_space<vmem>>) attributes {dimension_semantics = [#tpu.dimension_semantics<arbitrary>], iteration_bounds = array<i64: 3>, scalar_prefetch = 0 : i64, scratch_operands = 2 : i64, tpu.core_type = #tpu.core_type<tc>, window_params = [{pipeline_mode = #tpu.pipeline_mode<synchronous>, transform_indices = @transform_0, window_bounds = array<i64: 32, 32>}, {pipeline_mode = #tpu.pipeline_mode<synchronous>, transform_indices = @transform_1, window_bounds = array<i64: 16, 32>}, {pipeline_mode = #tpu.pipeline_mode<synchronous>, transform_indices = @transform_2, window_bounds = array<i64: 16, 32>}, {pipeline_mode = #tpu.pipeline_mode<synchronous>, transform_indices = @transform_3, window_bounds = array<i64: 16, 32>}, {pipeline_mode = #tpu.pipeline_mode<synchronous>, transform_indices = @transform_4, window_bounds = array<i64: 32, 16>}, {pipeline_mode = #tpu.pipeline_mode<synchronous>, transform_indices = @transform_5, window_bounds = array<i64: 32, 16>}, {pipeline_mode = #tpu.pipeline_mode<synchronous>, transform_indices = @transform_6, window_bounds = array<i64: 32, 64>}, {pipeline_mode = #tpu.pipeline_mode<synchronous>, transform_indices = @transform_7, window_bounds = array<i64: 1, 64>}, {pipeline_mode = #tpu.pipeline_mode<synchronous>, transform_indices = @transform_8, window_bounds = array<i64: 32, 64>}, {pipeline_mode = #tpu.pipeline_mode<synchronous>, transform_indices = @transform_9, window_bounds = array<i64: 1, 64>}, {pipeline_mode = #tpu.pipeline_mode<synchronous>, transform_indices = @transform_10, window_bounds = array<i64: 64, 64>}, {pipeline_mode = #tpu.pipeline_mode<synchronous>, transform_indices = @transform_11, window_bounds = array<i64: 1, 64>}, {pipeline_mode = #tpu.pipeline_mode<synchronous>, transform_indices = @transform_12, window_bounds = array<i64: 64, 64>}, {pipeline_mode = #tpu.pipeline_mode<synchronous>, transform_indices = @transform_13, window_bounds = array<i64: 1, 64>}, {pipeline_mode = #tpu.pipeline_mode<synchronous>, transform_indices = @transform_14, window_bounds = array<i64: 2, 64, 96>}, {pipeline_mode = #tpu.pipeline_mode<synchronous>, transform_indices = @transform_15, window_bounds = array<i64: 2, 32, 96>}, {pipeline_mode = #tpu.pipeline_mode<synchronous>, transform_indices = @transform_16, window_bounds = array<i64: 2, 1, 96>}, {pipeline_mode = #tpu.pipeline_mode<synchronous>, transform_indices = @transform_17, window_bounds = array<i64: 2, 1, 96>}, {transform_indices = @transform_18, window_bounds = array<i64: 1, 32, 32>}, {transform_indices = @transform_19, window_bounds = array<i64: 1, 16, 32>}]} {
    %c0_i32 = arith.constant 0 : i32
    %0 = arith.cmpi eq, %arg0, %c0_i32 : i32
    %1 = arith.extui %0 : i1 to i32
    %c0_i32_0 = arith.constant 0 : i32
    %2 = arith.cmpi ne, %1, %c0_i32_0 : i32
    scf.if %2 {
      %c0_81 = arith.constant 0 : index
      %c0_82 = arith.constant 0 : index
      %143 = vector.load %arg1[%c0_81, %c0_82] : memref<32x32xf32, #tpu.memory_space<vmem>>, vector<32x32xf32>
      %c0_83 = arith.constant 0 : index
      %c0_84 = arith.constant 0 : index
      %144 = vector.load %arg21[%c0_83, %c0_84] : memref<32x32xf32, #tpu.memory_space<vmem>>, vector<32x32xf32>
      tpu.vector_store %arg21[%c0_83, %c0_84], %143 {strides = array<i32>} : memref<32x32xf32, #tpu.memory_space<vmem>>, vector<32x32xf32>,
      %c0_85 = arith.constant 0 : index
      %c0_86 = arith.constant 0 : index
      %145 = vector.load %arg2[%c0_85, %c0_86] : memref<16x32xf32, #tpu.memory_space<vmem>>, vector<16x32xf32>
      %c0_87 = arith.constant 0 : index
      %c0_88 = arith.constant 0 : index
      %146 = vector.load %arg22[%c0_87, %c0_88] : memref<16x32xf32, #tpu.memory_space<vmem>>, vector<16x32xf32>
      tpu.vector_store %arg22[%c0_87, %c0_88], %145 {strides = array<i32>} : memref<16x32xf32, #tpu.memory_space<vmem>>, vector<16x32xf32>,
    } else {
    }
    %c0 = arith.constant 0 : index
    %c0_1 = arith.constant 0 : index
    %3 = vector.load %arg21[%c0, %c0_1] : memref<32x32xf32, #tpu.memory_space<vmem>>, vector<32x32xf32>
    %c0_2 = arith.constant 0 : index
    %c0_3 = arith.constant 0 : index
    %4 = vector.load %arg22[%c0_2, %c0_3] : memref<16x32xf32, #tpu.memory_space<vmem>>, vector<16x32xf32>
    %5 = arith.truncf %3 : vector<32x32xf32> to vector<32x32xbf16>
    %c0_4 = arith.constant 0 : index
    %c0_5 = arith.constant 0 : index
    %6 = vector.load %arg7[%c0_4, %c0_5] : memref<32x64xbf16, #tpu.memory_space<vmem>>, vector<32x64xbf16>
    %cst = arith.constant dense<0.000000e+00> : vector<32x64xf32>
    %7 = tpu.matmul %5, %6, %cst {dimension_numbers = #tpu.dot_dimension_numbers<[1], [0], [0], [1], [0, 0, 1, 1], [], []>} : vector<32x32xbf16>, vector<32x64xbf16>, vector<32x64xf32> -> vector<32x64xf32>
    %c0_6 = arith.constant 0 : index
    %c0_7 = arith.constant 0 : index
    %8 = vector.load %arg8[%c0_6, %c0_7] : memref<1x64xf32, #tpu.memory_space<vmem>>, vector<1x64xf32>
    %9 = vector.broadcast %8 : vector<1x64xf32> to vector<32x64xf32>
    %10 = arith.addf %7, %9 : vector<32x64xf32>
    %cst_8 = arith.constant 0.000000e+00 : f32
    %11 = vector.broadcast %cst_8 : f32 to vector<32x64xf32>
    %12 = arith.maximumf %10, %11 : vector<32x64xf32>
    %13 = arith.truncf %12 : vector<32x64xf32> to vector<32x64xbf16>
    %c0_9 = arith.constant 0 : index
    %c0_10 = arith.constant 0 : index
    %14 = vector.load %arg11[%c0_9, %c0_10] : memref<64x64xbf16, #tpu.memory_space<vmem>>, vector<64x64xbf16>
    %cst_11 = arith.constant dense<0.000000e+00> : vector<32x64xf32>
    %15 = tpu.matmul %13, %14, %cst_11 {dimension_numbers = #tpu.dot_dimension_numbers<[1], [0], [0], [1], [0, 0, 1, 1], [], []>} : vector<32x64xbf16>, vector<64x64xbf16>, vector<32x64xf32> -> vector<32x64xf32>
    %c0_12 = arith.constant 0 : index
    %c0_13 = arith.constant 0 : index
    %16 = vector.load %arg12[%c0_12, %c0_13] : memref<1x64xf32, #tpu.memory_space<vmem>>, vector<1x64xf32>
    %17 = vector.broadcast %16 : vector<1x64xf32> to vector<32x64xf32>
    %18 = arith.addf %15, %17 : vector<32x64xf32>
    %19 = arith.truncf %18 : vector<32x64xf32> to vector<32x64xbf16>
    %20 = arith.truncf %4 : vector<16x32xf32> to vector<16x32xbf16>
    %c0_14 = arith.constant 0 : index
    %c0_15 = arith.constant 0 : index
    %21 = vector.load %arg9[%c0_14, %c0_15] : memref<32x64xbf16, #tpu.memory_space<vmem>>, vector<32x64xbf16>
    %cst_16 = arith.constant dense<0.000000e+00> : vector<16x64xf32>
    %22 = tpu.matmul %20, %21, %cst_16 {dimension_numbers = #tpu.dot_dimension_numbers<[1], [0], [0], [1], [0, 0, 1, 1], [], []>} : vector<16x32xbf16>, vector<32x64xbf16>, vector<16x64xf32> -> vector<16x64xf32>
    %c0_17 = arith.constant 0 : index
    %c0_18 = arith.constant 0 : index
    %23 = vector.load %arg10[%c0_17, %c0_18] : memref<1x64xf32, #tpu.memory_space<vmem>>, vector<1x64xf32>
    %24 = vector.broadcast %23 : vector<1x64xf32> to vector<16x64xf32>
    %25 = arith.addf %22, %24 : vector<16x64xf32>
    %cst_19 = arith.constant 0.000000e+00 : f32
    %26 = vector.broadcast %cst_19 : f32 to vector<16x64xf32>
    %27 = arith.maximumf %25, %26 : vector<16x64xf32>
    %28 = arith.truncf %27 : vector<16x64xf32> to vector<16x64xbf16>
    %c0_20 = arith.constant 0 : index
    %c0_21 = arith.constant 0 : index
    %29 = vector.load %arg13[%c0_20, %c0_21] : memref<64x64xbf16, #tpu.memory_space<vmem>>, vector<64x64xbf16>
    %cst_22 = arith.constant dense<0.000000e+00> : vector<16x64xf32>
    %30 = tpu.matmul %28, %29, %cst_22 {dimension_numbers = #tpu.dot_dimension_numbers<[1], [0], [0], [1], [0, 0, 1, 1], [], []>} : vector<16x64xbf16>, vector<64x64xbf16>, vector<16x64xf32> -> vector<16x64xf32>
    %c0_23 = arith.constant 0 : index
    %c0_24 = arith.constant 0 : index
    %31 = vector.load %arg14[%c0_23, %c0_24] : memref<1x64xf32, #tpu.memory_space<vmem>>, vector<1x64xf32>
    %32 = vector.broadcast %31 : vector<1x64xf32> to vector<16x64xf32>
    %33 = arith.addf %30, %32 : vector<16x64xf32>
    %34 = arith.truncf %33 : vector<16x64xf32> to vector<16x64xbf16>
    %c0_25 = arith.constant 0 : index
    %c0_26 = arith.constant 0 : index
    %35 = vector.load %arg3[%c0_25, %c0_26] : memref<16x32xbf16, #tpu.memory_space<vmem>>, vector<16x32xbf16>
    %c0_27 = arith.constant 0 : index
    %c0_28 = arith.constant 0 : index
    %36 = vector.load %arg4[%c0_27, %c0_28] : memref<16x32xbf16, #tpu.memory_space<vmem>>, vector<16x32xbf16>
    %cst_29 = arith.constant dense<0.000000e+00> : vector<16x64xf32>
    %37 = tpu.matmul %35, %19, %cst_29 {dimension_numbers = #tpu.dot_dimension_numbers<[1], [0], [0], [1], [0, 0, 1, 1], [], []>} : vector<16x32xbf16>, vector<32x64xbf16>, vector<16x64xf32> -> vector<16x64xf32>
    %cst_30 = arith.constant dense<0.000000e+00> : vector<16x64xf32>
    %38 = tpu.matmul %36, %19, %cst_30 {dimension_numbers = #tpu.dot_dimension_numbers<[1], [0], [0], [1], [0, 0, 1, 1], [], []>} : vector<16x32xbf16>, vector<32x64xbf16>, vector<16x64xf32> -> vector<16x64xf32>
    %39 = tpu.iota {dimensions = array<i32: 1>} : vector<16x64xi32>
    %c32_i32 = arith.constant 32 : i32
    %40 = vector.broadcast %c32_i32 : i32 to vector<16x64xi32>
    %41 = arith.cmpi slt, %39, %40 : vector<16x64xi32>
    %42 = arith.select %41, %37, %38 : vector<16x64xi1>, vector<16x64xf32>
    %c0_31 = arith.constant 0 : index
    %c0_32 = arith.constant 0 : index
    %43 = vector.load %arg5[%c0_31, %c0_32] : memref<32x16xbf16, #tpu.memory_space<vmem>>, vector<32x16xbf16>
    %c0_33 = arith.constant 0 : index
    %c0_34 = arith.constant 0 : index
    %44 = vector.load %arg6[%c0_33, %c0_34] : memref<32x16xbf16, #tpu.memory_space<vmem>>, vector<32x16xbf16>
    %cst_35 = arith.constant dense<0.000000e+00> : vector<32x64xf32>
    %45 = tpu.matmul %43, %34, %cst_35 {dimension_numbers = #tpu.dot_dimension_numbers<[1], [0], [0], [1], [0, 0, 1, 1], [], []>} : vector<32x16xbf16>, vector<16x64xbf16>, vector<32x64xf32> -> vector<32x64xf32>
    %cst_36 = arith.constant dense<0.000000e+00> : vector<32x64xf32>
    %46 = tpu.matmul %44, %34, %cst_36 {dimension_numbers = #tpu.dot_dimension_numbers<[1], [0], [0], [1], [0, 0, 1, 1], [], []>} : vector<32x16xbf16>, vector<16x64xbf16>, vector<32x64xf32> -> vector<32x64xf32>
    %47 = tpu.iota {dimensions = array<i32: 1>} : vector<32x64xi32>
    %c32_i32_37 = arith.constant 32 : i32
    %48 = vector.broadcast %c32_i32_37 : i32 to vector<32x64xi32>
    %49 = arith.cmpi slt, %47, %48 : vector<32x64xi32>
    %50 = arith.select %49, %45, %46 : vector<32x64xi1>, vector<32x64xf32>
    %51 = arith.truncf %42 : vector<16x64xf32> to vector<16x64xbf16>
    %c0_38 = arith.constant 0 : index
    %c0_39 = arith.constant 0 : index
    %c0_40 = arith.constant 0 : index
    %52 = vector.load %arg15[%c0_38, %c0_39, %c0_40] : memref<2x64x96xbf16, #tpu.memory_space<vmem>>, vector<1x64x96xbf16>
    %53 = vector.shape_cast %52 : vector<1x64x96xbf16> to vector<64x96xbf16>
    %cst_41 = arith.constant dense<0.000000e+00> : vector<16x96xf32>
    %54 = tpu.matmul %51, %53, %cst_41 {dimension_numbers = #tpu.dot_dimension_numbers<[1], [0], [0], [1], [0, 0, 1, 1], [], []>} : vector<16x64xbf16>, vector<64x96xbf16>, vector<16x96xf32> -> vector<16x96xf32>
    %c0_42 = arith.constant 0 : index
    %c0_43 = arith.constant 0 : index
    %c0_44 = arith.constant 0 : index
    %55 = vector.load %arg17[%c0_42, %c0_43, %c0_44] : memref<2x1x96xf32, #tpu.memory_space<vmem>>, vector<1x1x96xf32>
    %56 = vector.shape_cast %55 : vector<1x1x96xf32> to vector<1x96xf32>
    %57 = vector.broadcast %56 : vector<1x96xf32> to vector<16x96xf32>
    %58 = arith.addf %54, %57 : vector<16x96xf32>
    %59 = arith.truncf %4 : vector<16x32xf32> to vector<16x32xbf16>
    %c0_45 = arith.constant 0 : index
    %c0_46 = arith.constant 0 : index
    %c0_47 = arith.constant 0 : index
    %60 = vector.load %arg16[%c0_45, %c0_46, %c0_47] : memref<2x32x96xbf16, #tpu.memory_space<vmem>>, vector<1x32x96xbf16>
    %61 = vector.shape_cast %60 : vector<1x32x96xbf16> to vector<32x96xbf16>
    %cst_48 = arith.constant dense<0.000000e+00> : vector<16x96xf32>
    %62 = tpu.matmul %59, %61, %cst_48 {dimension_numbers = #tpu.dot_dimension_numbers<[1], [0], [0], [1], [0, 0, 1, 1], [], []>} : vector<16x32xbf16>, vector<32x96xbf16>, vector<16x96xf32> -> vector<16x96xf32>
    %c0_49 = arith.constant 0 : index
    %c0_50 = arith.constant 0 : index
    %c0_51 = arith.constant 0 : index
    %63 = vector.load %arg18[%c0_49, %c0_50, %c0_51] : memref<2x1x96xf32, #tpu.memory_space<vmem>>, vector<1x1x96xf32>
    %64 = vector.shape_cast %63 : vector<1x1x96xf32> to vector<1x96xf32>
    %65 = vector.broadcast %64 : vector<1x96xf32> to vector<16x96xf32>
    %66 = arith.addf %62, %65 : vector<16x96xf32>
    %67 = vector.extract_strided_slice %58 {offsets = [0, 0], sizes = [16, 32], strides = [1, 1]} : vector<16x96xf32> to vector<16x32xf32>
    %68 = vector.extract_strided_slice %66 {offsets = [0, 0], sizes = [16, 32], strides = [1, 1]} : vector<16x96xf32> to vector<16x32xf32>
    %69 = arith.addf %67, %68 : vector<16x32xf32>
    %70 = arith.negf %69 : vector<16x32xf32>
    %71 = math.exp %70 : vector<16x32xf32>
    %cst_52 = arith.constant 1.000000e+00 : f32
    %72 = vector.broadcast %cst_52 : f32 to vector<16x32xf32>
    %73 = arith.addf %72, %71 : vector<16x32xf32>
    %74 = arith.divf %72, %73 : vector<16x32xf32>
    %75 = vector.extract_strided_slice %58 {offsets = [0, 32], sizes = [16, 32], strides = [1, 1]} : vector<16x96xf32> to vector<16x32xf32>
    %76 = vector.extract_strided_slice %66 {offsets = [0, 32], sizes = [16, 32], strides = [1, 1]} : vector<16x96xf32> to vector<16x32xf32>
    %77 = arith.addf %75, %76 : vector<16x32xf32>
    %78 = arith.negf %77 : vector<16x32xf32>
    %79 = math.exp %78 : vector<16x32xf32>
    %cst_53 = arith.constant 1.000000e+00 : f32
    %80 = vector.broadcast %cst_53 : f32 to vector<16x32xf32>
    %81 = arith.addf %80, %79 : vector<16x32xf32>
    %82 = arith.divf %80, %81 : vector<16x32xf32>
    %83 = vector.extract_strided_slice %58 {offsets = [0, 64], sizes = [16, 32], strides = [1, 1]} : vector<16x96xf32> to vector<16x32xf32>
    %84 = vector.extract_strided_slice %66 {offsets = [0, 64], sizes = [16, 32], strides = [1, 1]} : vector<16x96xf32> to vector<16x32xf32>
    %85 = arith.mulf %74, %84 : vector<16x32xf32>
    %86 = arith.addf %83, %85 : vector<16x32xf32>
    %87 = math.tanh %86 : vector<16x32xf32>
    %cst_54 = arith.constant 1.000000e+00 : f32
    %88 = vector.broadcast %cst_54 : f32 to vector<16x32xf32>
    %89 = arith.subf %88, %82 : vector<16x32xf32>
    %90 = arith.mulf %89, %87 : vector<16x32xf32>
    %91 = arith.mulf %82, %4 : vector<16x32xf32>
    %92 = arith.addf %90, %91 : vector<16x32xf32>
    %93 = arith.truncf %50 : vector<32x64xf32> to vector<32x64xbf16>
    %c1 = arith.constant 1 : index
    %c0_55 = arith.constant 0 : index
    %c0_56 = arith.constant 0 : index
    %94 = vector.load %arg15[%c1, %c0_55, %c0_56] : memref<2x64x96xbf16, #tpu.memory_space<vmem>>, vector<1x64x96xbf16>
    %95 = vector.shape_cast %94 : vector<1x64x96xbf16> to vector<64x96xbf16>
    %cst_57 = arith.constant dense<0.000000e+00> : vector<32x96xf32>
    %96 = tpu.matmul %93, %95, %cst_57 {dimension_numbers = #tpu.dot_dimension_numbers<[1], [0], [0], [1], [0, 0, 1, 1], [], []>} : vector<32x64xbf16>, vector<64x96xbf16>, vector<32x96xf32> -> vector<32x96xf32>
    %c1_58 = arith.constant 1 : index
    %c0_59 = arith.constant 0 : index
    %c0_60 = arith.constant 0 : index
    %97 = vector.load %arg17[%c1_58, %c0_59, %c0_60] : memref<2x1x96xf32, #tpu.memory_space<vmem>>, vector<1x1x96xf32>
    %98 = vector.shape_cast %97 : vector<1x1x96xf32> to vector<1x96xf32>
    %99 = vector.broadcast %98 : vector<1x96xf32> to vector<32x96xf32>
    %100 = arith.addf %96, %99 : vector<32x96xf32>
    %101 = arith.truncf %3 : vector<32x32xf32> to vector<32x32xbf16>
    %c1_61 = arith.constant 1 : index
    %c0_62 = arith.constant 0 : index
    %c0_63 = arith.constant 0 : index
    %102 = vector.load %arg16[%c1_61, %c0_62, %c0_63] : memref<2x32x96xbf16, #tpu.memory_space<vmem>>, vector<1x32x96xbf16>
    %103 = vector.shape_cast %102 : vector<1x32x96xbf16> to vector<32x96xbf16>
    %cst_64 = arith.constant dense<0.000000e+00> : vector<32x96xf32>
    %104 = tpu.matmul %101, %103, %cst_64 {dimension_numbers = #tpu.dot_dimension_numbers<[1], [0], [0], [1], [0, 0, 1, 1], [], []>} : vector<32x32xbf16>, vector<32x96xbf16>, vector<32x96xf32> -> vector<32x96xf32>
    %c1_65 = arith.constant 1 : index
    %c0_66 = arith.constant 0 : index
    %c0_67 = arith.constant 0 : index
    %105 = vector.load %arg18[%c1_65, %c0_66, %c0_67] : memref<2x1x96xf32, #tpu.memory_space<vmem>>, vector<1x1x96xf32>
    %106 = vector.shape_cast %105 : vector<1x1x96xf32> to vector<1x96xf32>
    %107 = vector.broadcast %106 : vector<1x96xf32> to vector<32x96xf32>
    %108 = arith.addf %104, %107 : vector<32x96xf32>
    %109 = vector.extract_strided_slice %100 {offsets = [0, 0], sizes = [32, 32], strides = [1, 1]} : vector<32x96xf32> to vector<32x32xf32>
    %110 = vector.extract_strided_slice %108 {offsets = [0, 0], sizes = [32, 32], strides = [1, 1]} : vector<32x96xf32> to vector<32x32xf32>
    %111 = arith.addf %109, %110 : vector<32x32xf32>
    %112 = arith.negf %111 : vector<32x32xf32>
    %113 = math.exp %112 : vector<32x32xf32>
    %cst_68 = arith.constant 1.000000e+00 : f32
    %114 = vector.broadcast %cst_68 : f32 to vector<32x32xf32>
    %115 = arith.addf %114, %113 : vector<32x32xf32>
    %116 = arith.divf %114, %115 : vector<32x32xf32>
    %117 = vector.extract_strided_slice %100 {offsets = [0, 32], sizes = [32, 32], strides = [1, 1]} : vector<32x96xf32> to vector<32x32xf32>
    %118 = vector.extract_strided_slice %108 {offsets = [0, 32], sizes = [32, 32], strides = [1, 1]} : vector<32x96xf32> to vector<32x32xf32>
    %119 = arith.addf %117, %118 : vector<32x32xf32>
    %120 = arith.negf %119 : vector<32x32xf32>
    %121 = math.exp %120 : vector<32x32xf32>
    %cst_69 = arith.constant 1.000000e+00 : f32
    %122 = vector.broadcast %cst_69 : f32 to vector<32x32xf32>
    %123 = arith.addf %122, %121 : vector<32x32xf32>
    %124 = arith.divf %122, %123 : vector<32x32xf32>
    %125 = vector.extract_strided_slice %100 {offsets = [0, 64], sizes = [32, 32], strides = [1, 1]} : vector<32x96xf32> to vector<32x32xf32>
    %126 = vector.extract_strided_slice %108 {offsets = [0, 64], sizes = [32, 32], strides = [1, 1]} : vector<32x96xf32> to vector<32x32xf32>
    %127 = arith.mulf %116, %126 : vector<32x32xf32>
    %128 = arith.addf %125, %127 : vector<32x32xf32>
    %129 = math.tanh %128 : vector<32x32xf32>
    %cst_70 = arith.constant 1.000000e+00 : f32
    %130 = vector.broadcast %cst_70 : f32 to vector<32x32xf32>
    %131 = arith.subf %130, %124 : vector<32x32xf32>
    %132 = arith.mulf %131, %129 : vector<32x32xf32>
    %133 = arith.mulf %124, %3 : vector<32x32xf32>
    %134 = arith.addf %132, %133 : vector<32x32xf32>
    %c0_71 = arith.constant 0 : index
    %c0_72 = arith.constant 0 : index
    %135 = vector.load %arg22[%c0_71, %c0_72] : memref<16x32xf32, #tpu.memory_space<vmem>>, vector<16x32xf32>
    tpu.vector_store %arg22[%c0_71, %c0_72], %92 {strides = array<i32>} : memref<16x32xf32, #tpu.memory_space<vmem>>, vector<16x32xf32>,
    %c0_73 = arith.constant 0 : index
    %c0_74 = arith.constant 0 : index
    %136 = vector.load %arg21[%c0_73, %c0_74] : memref<32x32xf32, #tpu.memory_space<vmem>>, vector<32x32xf32>
    tpu.vector_store %arg21[%c0_73, %c0_74], %134 {strides = array<i32>} : memref<32x32xf32, #tpu.memory_space<vmem>>, vector<32x32xf32>,
    %c0_75 = arith.constant 0 : index
    %c0_76 = arith.constant 0 : index
    %c0_77 = arith.constant 0 : index
    %137 = vector.load %arg20[%c0_75, %c0_76, %c0_77] : memref<1x16x32xf32, #tpu.memory_space<vmem>>, vector<1x16x32xf32>
    %138 = vector.shape_cast %137 : vector<1x16x32xf32> to vector<16x32xf32>
    %139 = vector.shape_cast %92 : vector<16x32xf32> to vector<1x16x32xf32>
    tpu.vector_store %arg20[%c0_75, %c0_76, %c0_77], %139 {strides = array<i32>} : memref<1x16x32xf32, #tpu.memory_space<vmem>>, vector<1x16x32xf32>,
    %c0_78 = arith.constant 0 : index
    %c0_79 = arith.constant 0 : index
    %c0_80 = arith.constant 0 : index
    %140 = vector.load %arg19[%c0_78, %c0_79, %c0_80] : memref<1x32x32xf32, #tpu.memory_space<vmem>>, vector<1x32x32xf32>
    %141 = vector.shape_cast %140 : vector<1x32x32xf32> to vector<32x32xf32>
    %142 = vector.shape_cast %134 : vector<32x32xf32> to vector<1x32x32xf32>
    tpu.vector_store %arg19[%c0_78, %c0_79, %c0_80], %142 {strides = array<i32>} : memref<1x32x32xf32, #tpu.memory_space<vmem>>, vector<1x32x32xf32>,
    return
  }
  func.func @transform_0(%arg0: i32) -> (i32, i32) {
    %c0_i32 = arith.constant 0 : i32
    %c0_i32_0 = arith.constant 0 : i32
    %c0_i32_1 = arith.constant 0 : i32
    return %c0_i32, %c0_i32_0 : i32, i32
  }
  func.func @transform_1(%arg0: i32) -> (i32, i32) {
    %c0_i32 = arith.constant 0 : i32
    %c0_i32_0 = arith.constant 0 : i32
    %c0_i32_1 = arith.constant 0 : i32
    return %c0_i32, %c0_i32_0 : i32, i32
  }
  func.func @transform_2(%arg0: i32) -> (i32, i32) {
    %c0_i32 = arith.constant 0 : i32
    %c0_i32_0 = arith.constant 0 : i32
    %c0_i32_1 = arith.constant 0 : i32
    return %c0_i32, %c0_i32_0 : i32, i32
  }
  func.func @transform_3(%arg0: i32) -> (i32, i32) {
    %c0_i32 = arith.constant 0 : i32
    %c0_i32_0 = arith.constant 0 : i32
    %c0_i32_1 = arith.constant 0 : i32
    return %c0_i32, %c0_i32_0 : i32, i32
  }
  func.func @transform_4(%arg0: i32) -> (i32, i32) {
    %c0_i32 = arith.constant 0 : i32
    %c0_i32_0 = arith.constant 0 : i32
    %c0_i32_1 = arith.constant 0 : i32
    return %c0_i32, %c0_i32_0 : i32, i32
  }
  func.func @transform_5(%arg0: i32) -> (i32, i32) {
    %c0_i32 = arith.constant 0 : i32
    %c0_i32_0 = arith.constant 0 : i32
    %c0_i32_1 = arith.constant 0 : i32
    return %c0_i32, %c0_i32_0 : i32, i32
  }
  func.func @transform_6(%arg0: i32) -> (i32, i32) {
    %c0_i32 = arith.constant 0 : i32
    %c0_i32_0 = arith.constant 0 : i32
    %c0_i32_1 = arith.constant 0 : i32
    return %c0_i32, %c0_i32_0 : i32, i32
  }
  func.func @transform_7(%arg0: i32) -> (i32, i32) {
    %c0_i32 = arith.constant 0 : i32
    %c0_i32_0 = arith.constant 0 : i32
    %c0_i32_1 = arith.constant 0 : i32
    return %c0_i32, %c0_i32_0 : i32, i32
  }
  func.func @transform_8(%arg0: i32) -> (i32, i32) {
    %c0_i32 = arith.constant 0 : i32
    %c0_i32_0 = arith.constant 0 : i32
    %c0_i32_1 = arith.constant 0 : i32
    return %c0_i32, %c0_i32_0 : i32, i32
  }
  func.func @transform_9(%arg0: i32) -> (i32, i32) {
    %c0_i32 = arith.constant 0 : i32
    %c0_i32_0 = arith.constant 0 : i32
    %c0_i32_1 = arith.constant 0 : i32
    return %c0_i32, %c0_i32_0 : i32, i32
  }
  func.func @transform_10(%arg0: i32) -> (i32, i32) {
    %c0_i32 = arith.constant 0 : i32
    %c0_i32_0 = arith.constant 0 : i32
    %c0_i32_1 = arith.constant 0 : i32
    return %c0_i32, %c0_i32_0 : i32, i32
  }
  func.func @transform_11(%arg0: i32) -> (i32, i32) {
    %c0_i32 = arith.constant 0 : i32
    %c0_i32_0 = arith.constant 0 : i32
    %c0_i32_1 = arith.constant 0 : i32
    return %c0_i32, %c0_i32_0 : i32, i32
  }
  func.func @transform_12(%arg0: i32) -> (i32, i32) {
    %c0_i32 = arith.constant 0 : i32
    %c0_i32_0 = arith.constant 0 : i32
    %c0_i32_1 = arith.constant 0 : i32
    return %c0_i32, %c0_i32_0 : i32, i32
  }
  func.func @transform_13(%arg0: i32) -> (i32, i32) {
    %c0_i32 = arith.constant 0 : i32
    %c0_i32_0 = arith.constant 0 : i32
    %c0_i32_1 = arith.constant 0 : i32
    return %c0_i32, %c0_i32_0 : i32, i32
  }
  func.func @transform_14(%arg0: i32) -> (i32, i32, i32) {
    %c0_i32 = arith.constant 0 : i32
    %c0_i32_0 = arith.constant 0 : i32
    %c0_i32_1 = arith.constant 0 : i32
    %c0_i32_2 = arith.constant 0 : i32
    return %c0_i32, %c0_i32_0, %c0_i32_1 : i32, i32, i32
  }
  func.func @transform_15(%arg0: i32) -> (i32, i32, i32) {
    %c0_i32 = arith.constant 0 : i32
    %c0_i32_0 = arith.constant 0 : i32
    %c0_i32_1 = arith.constant 0 : i32
    %c0_i32_2 = arith.constant 0 : i32
    return %c0_i32, %c0_i32_0, %c0_i32_1 : i32, i32, i32
  }
  func.func @transform_16(%arg0: i32) -> (i32, i32, i32) {
    %c0_i32 = arith.constant 0 : i32
    %c0_i32_0 = arith.constant 0 : i32
    %c0_i32_1 = arith.constant 0 : i32
    %c0_i32_2 = arith.constant 0 : i32
    return %c0_i32, %c0_i32_0, %c0_i32_1 : i32, i32, i32
  }
  func.func @transform_17(%arg0: i32) -> (i32, i32, i32) {
    %c0_i32 = arith.constant 0 : i32
    %c0_i32_0 = arith.constant 0 : i32
    %c0_i32_1 = arith.constant 0 : i32
    %c0_i32_2 = arith.constant 0 : i32
    return %c0_i32, %c0_i32_0, %c0_i32_1 : i32, i32, i32
  }
  func.func @transform_18(%arg0: i32) -> (i32, i32, i32) {
    %c0_i32 = arith.constant 0 : i32
    %c0_i32_0 = arith.constant 0 : i32
    %c0_i32_1 = arith.constant 0 : i32
    return %arg0, %c0_i32, %c0_i32_0 : i32, i32, i32
  }
  func.func @transform_19(%arg0: i32) -> (i32, i32, i32) {
    %c0_i32 = arith.constant 0 : i32
    %c0_i32_0 = arith.constant 0 : i32
    %c0_i32_1 = arith.constant 0 : i32
    return %arg0, %c0_i32, %c0_i32_0 : i32, i32, i32
  }
}

</mosaic_0001>

<bundles_post_ra>
// kernel: tpu_custom_call.1
= control target key start
LH: loop header
LB: loop body
LE: loop exit
PB: predicated region body
PF: predicated region fallthrough
CT: control target
= control target key end

     0   :  { %s4385_s0 = inlined_call_operand.hbm [shape: f32[32,32], index: 0, kind: input, shape index: {}]   ;;  %s4386_s1 = inlined_call_operand.hbm [shape: f32[16,32], index: 1, kind: input, shape index: {}]   ;;  %s4387_s2 = inlined_call_operand.hbm [shape: bf16[16,32], index: 2, kind: input, shape index: {}]   ;;  %s4388_s3 = inlined_call_operand.hbm [shape: bf16[16,32], index: 3, kind: input, shape index: {}]   ;;  %s4389_s4 = inlined_call_operand.hbm [shape: bf16[32,16], index: 4, kind: input, shape index: {}]   ;;  %s4390_s5 = inlined_call_operand.hbm [shape: bf16[32,16], index: 5, kind: input, shape index: {}]   ;;  %s4391_s6 = inlined_call_operand.hbm [shape: bf16[32,64], index: 6, kind: input, shape index: {}]   ;;  %s4392_s7 = inlined_call_operand.hbm [shape: f32[1,64], index: 7, kind: input, shape index: {}]   ;;  %s4393_s8 = inlined_call_operand.hbm [shape: bf16[32,64], index: 8, kind: input, shape index: {}]   ;;  %s4394_s9 = inlined_call_operand.hbm [shape: f32[1,64], index: 9, kind: input, shape index: {}]   ;;  %s4395_s10 = inlined_call_operand.hbm [shape: bf16[64,64], index: 10, kind: input, shape index: {}]   ;;  %s4396_s11 = inlined_call_operand.hbm [shape: f32[1,64], index: 11, kind: input, shape index: {}]   ;;  %s4397_s12 = inlined_call_operand.hbm [shape: bf16[64,64], index: 12, kind: input, shape index: {}]   ;;  %s4398_s13 = inlined_call_operand.hbm [shape: f32[1,64], index: 13, kind: input, shape index: {}]   ;;  %s4399_s14 = inlined_call_operand.hbm [shape: bf16[2,64,96], index: 14, kind: input, shape index: {}]   ;;  %s4400_s15 = inlined_call_operand.hbm [shape: bf16[2,32,96], index: 15, kind: input, shape index: {}]   ;;  %s4401_s16 = inlined_call_operand.hbm [shape: f32[2,1,96], index: 16, kind: input, shape index: {}]   ;;  %s4402_s17 = inlined_call_operand.hbm [shape: f32[2,1,96], index: 17, kind: input, shape index: {}]   ;;  %s4403_s18 = inlined_call_operand.hbm [shape: f32[3,32,32], index: 18, kind: output, shape index: {0}]   ;;  %s4404_s19 = inlined_call_operand.hbm [shape: f32[3,16,32], index: 19, kind: output, shape index: {1}]  }
   0x1   :  { %4437 = sst [smem:[#allocation58_spill]] %s4385_s0 }
   0x2   :  { %4438 = sst [smem:[#allocation59_spill]] %s4386_s1 }
   0x3   :  { %4439 = sst [smem:[#allocation60_spill]] %s4387_s2 }
   0x4   :  { %4440 = sst [smem:[#allocation61_spill]] %s4388_s3 }
   0x5   :  { %4441 = sst [smem:[#allocation62_spill]] %s4389_s4 }
   0x6   :  { %4442 = sst [smem:[#allocation63_spill]] %s4401_s16 }
   0x7   :  { %4443 = sst [smem:[#allocation64_spill]] %s4402_s17 }
   0x8   :  { %4444 = sst [smem:[#allocation65_spill]] %s4403_s18 }
   0x9   :  { %4445 = sst [smem:[#allocation66_spill]] %s4404_s19 }
   0xa   :  { %25 = vsyncpa [#allocation5], 0 }
   0xb   :  { %26 = vsyncpa [#allocation8], 0 }
   0xc   :  { %27 = vsyncpa [#allocation11], 0 }
   0xd   :  { %28 = vsyncpa [#allocation14], 0 }
   0xe   :  { %29 = vsyncpa [#allocation17], 0 }
   0xf   :  { %30 = vsyncpa [#allocation20], 0 }
  0x10   :  { %31 = vsyncpa [#allocation23], 0 }
  0x11   :  { %32 = vsyncpa [#allocation26], 0 }
  0x12   :  { %33 = vsyncpa [#allocation29], 0 }
  0x13   :  { %34 = vsyncpa [#allocation32], 0 }
  0x14   :  { %35 = vsyncpa [#allocation6], 0 }
  0x15   :  { %37 = vsyncpa [#allocation6 + $0x1], 0 }
  0x16   :  { %38 = vsyncpa [#allocation35], 0 }
  0x17   :  { %40 = vsyncpa [#allocation35 + $0x1], 0  ;;  %s3633_s0 = smov 0   ;;  %s3635_s30 = smov 0  }
  0x18   :  { %s3637_s20 = smov 0   ;;  %s3639_s21 = smov 0  }
  0x19 LB: > { %4446 = sst [smem:[#allocation48_spill]] %s3486_s0  ;;  %s3654_s1 = sadd.s32 4294967295, %s3498_s21   ;;  %s3498_s21 = sphi %s3639_s21, %s4509_s21   ;;  %s3494_s20 = sphi %s3637_s20, %s4512_s20   ;;  %s3490_s30 = sphi %s3635_s30, %s4511_s30   ;;  %s3486_s0 = sphi %s3633_s0, %s4510_s0  }
  0x1a   : > { %4447 = sst [smem:[#allocation49_spill]] %s3490_s30  ;;  %s2286_s22 = sadd.s32 4294967294, %s3498_s21  }
  0x1b   : > { %4448 = sst [smem:[#allocation50_spill]] %s3494_s20  ;;  %s3658_s2 = sadd.s32 1, %s3498_s21  }
  0x1c   : > { %4449 = sst [smem:[#allocation51_spill]] %s3498_s21  ;;  %s431_s23 = sadd.s32 1, %s3494_s20 }
  0x1d   : > { %4450 = sst [smem:[#allocation52_spill]] %s3654_s1  ;;  %s428_s24 = ssub.s32 %s3498_s21, %s3658_s2 }
  0x1e   : > { %4451 = sst [smem:[#allocation53_spill]] %s3658_s2  ;;  %p441_p0 = scmp.ne.s32.totalorder %s3494_s20, %s3490_s30 }
  0x1f   : > { %p429_p1 = scmp.eq.s32.totalorder %s428_s24, 0  ;;  %p442_p2 = scmp.eq.s32.totalorder %s3654_s1, 2 }
  0x20   : > { %p447_p3 = scmp.ne.s32.totalorder %s3490_s30, %s3486_s0  ;;  %p448_p4 = scmp.eq.s32.totalorder %s2286_s22, 2 }
  0x21   : > { %s3669_s25 = scalar_select %p429_p1, %s3494_s20, %s431_s23  }
  0x22   : > { %p3671_p5 = por %p442_p2, %p441_p0  ;;  %p3675_p6 = por %p448_p4, %p447_p3 }
  0x23   : > { %4452 = sst [smem:[#allocation54_spill]] %s3669_s25  ;;  %p2287_p7 = scmp.ge.s32.totalorder %s3498_s21, 1 }
  0x24   : > { %s4453_s3 = scalar_select %p3671_p5, 1, 0 }
  0x25   : > { %s4455_s26 = scalar_select %p3675_p6, 1, 0 }
  0x26   : > { %4454 = sst [smem:[#allocation55_spill]] %s4453_s3  ;;  %p481_p8 = scmp.lt.s32.totalorder %s3498_s21, 4 }
  0x27   : > { %4456 = sst [smem:[#allocation56_spill]] %s4455_s26  ;;  %p4417_p10 = scmp.eq.s32.totalorder %s3654_s1, 0 }
  0x28   : > { %p3683_p11 = pnand %p2287_p7, %p481_p8  ;;  %s3500_s28 = smov [#allocation7]  }
  0x29   : > { %s506_s29 = sshll.u32 %s3500_s28, 4  ;;  %s3501_s23 = smov [#allocation10]   ;;  %s507_s29 = int_to_ptr.vmem [resolvable:$true] %s506_s29 }
  0x2a   : > { %s4457_s27 = scalar_select %p3683_p11, 1, 0 }
  0x2b   : > { %p2632_p12 = pneg %p3683_p11  ;;  %s532_s24 = sshll.u32 %s3501_s23, 4  ;;  %s533_s24 = int_to_ptr.vmem [resolvable:$true] %s532_s24 }
  0x2c   : > { %4458 = sst [smem:[#allocation57_spill]] %s4457_s27  ;;  %s4460_s2 = sld [smem:[#allocation59_spill]] }
  0x2d   : > { %p3691_p13 = pnand %p4417_p10, %p2632_p12 }
  0x2f   : > { %p3703_p1 = pneg %p3691_p13 }
  0x32   : > { %s2860_s26 = scalar_lea.hbm %s4460_s2, 256 }
  0x33   : > { %p2861_p0 = scmp.ne.s32.totalorder %s4460_s2, %s2860_s26  ;;  %p2867_p4 = scmp.lt.u32.totalorder %s2860_s26, %s4460_s2 }
  0x35   : > { %p2863_p2 = pnand %p3703_p1, %p2861_p0 }
  0x37   : > { %p2864_p3 = pneg %p2863_p2 }
  0x39   : > { %p2869_p7 = pnand %p2867_p4, %p2864_p3 }
  0x3b   : > { %2872 = shalt.err (!%p2869_p7)
}
  0x3c   : > { %s2873_s20 = scalar_lea.vmem %s507_s29, 256  ;;  %p2881_p10 = scmp.lt.s32.totalorder %s507_s29, %s507_s29 }
  0x3d   : > { %p2874_p8 = scmp.ne.s32.totalorder %s507_s29, %s2873_s20  ;;  %p2882_p6 = scmp.lt.s32.totalorder %s2873_s20, %s2873_s20 }
  0x3f   : > { %p2876_p12 = pnand %p2874_p8, %p3703_p1  ;;  %p2883_p5 = por %p2882_p6, %p2881_p10 }
  0x41   : > { %p2877_p9 = pneg %p2876_p12 }
  0x43   : > { %p2884_p11 = pnand %p2883_p5, %p2877_p9 }
  0x45   : > { %2887 = shalt.err (!%p2884_p11)
}
  0x46   : > { %s4429_s0 = smov 128   ;;  %s4430_s21 = smov 8  }
  0x47   : > { %2638 = dma.hbm_to_vmem [thread:$0]  (!%p3691_p13), %s4460_s2, 256, %s507_s29, [#allocation8], %s4429_s0, %s4429_s0, %s4430_s21  }
  0x48   : > { %s3504_s25 = smov [#allocation13]   ;;  %s4462_s3 = sld [smem:[#allocation61_spill]] }
  0x49   : > { %s558_s26 = sshll.u32 %s3504_s25, 4  ;;  %s559_s26 = int_to_ptr.vmem [resolvable:$true] %s558_s26 }
  0x4e   : > { %s2888_s30 = scalar_lea.hbm %s4462_s3, 128 }
  0x4f   : > { %p2889_p5 = scmp.ne.s32.totalorder %s4462_s3, %s2888_s30  ;;  %p2895_p10 = scmp.lt.u32.totalorder %s2888_s30, %s4462_s3 }
  0x51   : > { %p2891_p6 = pnand %p2889_p5, %p3703_p1 }
  0x53   : > { %p2892_p9 = pneg %p2891_p6 }
  0x55   : > { %p2897_p11 = pnand %p2895_p10, %p2892_p9 }
  0x57   : > { %2900 = shalt.err (!%p2897_p11)
}
  0x58   : > { %s2901_s29 = scalar_lea.vmem %s533_s24, 128  ;;  %p2909_p4 = scmp.lt.s32.totalorder %s533_s24, %s533_s24 }
  0x59   : > { %p2902_p0 = scmp.ne.s32.totalorder %s533_s24, %s2901_s29  ;;  %p2910_p7 = scmp.lt.s32.totalorder %s2901_s29, %s2901_s29 }
  0x5b   : > { %p2904_p2 = pnand %p2902_p0, %p3703_p1  ;;  %p2911_p8 = por %p2910_p7, %p2909_p4 }
  0x5d   : > { %p2905_p3 = pneg %p2904_p2 }
  0x5f   : > { %p2912_p12 = pnand %p2911_p8, %p2905_p3 }
  0x61   : > { %2915 = shalt.err (!%p2912_p12)
}
  0x62   : > { %s4431_s1 = smov 64   ;;  %s4433_s27 = smov 4  }
  0x63   : > { %2644 = dma.hbm_to_vmem [thread:$0]  (!%p3691_p13), %s4462_s3, 128, %s533_s24, [#allocation11], %s4431_s1, %s4431_s1, %s4433_s27  }
  0x64   : > { %s2916_s19 = scalar_lea.hbm %s4390_s5, 256 }
  0x65   : > { %p2917_p5 = scmp.ne.s32.totalorder %s4390_s5, %s2916_s19  ;;  %p2923_p10 = scmp.lt.u32.totalorder %s2916_s19, %s4390_s5 }
  0x67   : > { %p2919_p6 = pnand %p2917_p5, %p3703_p1 }
  0x69   : > { %p2920_p9 = pneg %p2919_p6 }
  0x6b   : > { %p2925_p11 = pnand %p2923_p10, %p2920_p9 }
  0x6d   : > { %2928 = shalt.err (!%p2925_p11)
}
  0x6e   : > { %s2929_s16 = scalar_lea.vmem %s559_s26, 256  ;;  %p2937_p4 = scmp.lt.s32.totalorder %s559_s26, %s559_s26 }
  0x6f   : > { %p2930_p0 = scmp.ne.s32.totalorder %s559_s26, %s2929_s16  ;;  %p2938_p7 = scmp.lt.s32.totalorder %s2929_s16, %s2929_s16 }
  0x71   : > { %p2932_p2 = pnand %p2930_p0, %p3703_p1  ;;  %p2939_p8 = por %p2938_p7, %p2937_p4 }
  0x73   : > { %p2933_p3 = pneg %p2932_p2 }
  0x75   : > { %p2940_p12 = pnand %p2939_p8, %p2933_p3 }
  0x77   : > { %2943 = shalt.err (!%p2940_p12)
}
  0x78   : > { %2650 = dma.hbm_to_vmem [thread:$0]  (!%p3691_p13), %s4390_s5, 256, %s559_s26, [#allocation14], %s4431_s1, %s4431_s1, %s4433_s27  }
  0x79   : > { %s3507_s30 = smov [#allocation16]   ;;  %s3508_s19 = smov [#allocation19]  }
  0x7a   : > { %s585_s18 = sshll.u32 %s3507_s30, 4  ;;  %s609_s25 = sshll.u32 %s3508_s19, 4  ;;  %s586_s18 = int_to_ptr.vmem [resolvable:$true] %s585_s18  ;;  %s610_s25 = int_to_ptr.vmem [resolvable:$true] %s609_s25 }
  0x7b   : > { %s2944_s29 = scalar_lea.hbm %s4392_s7, 16 }
  0x7c   : > { %p2945_p5 = scmp.ne.s32.totalorder %s4392_s7, %s2944_s29  ;;  %p2951_p10 = scmp.lt.u32.totalorder %s2944_s29, %s4392_s7 }
  0x7e   : > { %p2947_p6 = pnand %p2945_p5, %p3703_p1 }
  0x80   : > { %p2948_p9 = pneg %p2947_p6 }
  0x82   : > { %p2953_p11 = pnand %p2951_p10, %p2948_p9 }
  0x84   : > { %2956 = shalt.err (!%p2953_p11)
}
  0x85   : > { %s2957_s26 = scalar_lea.vmem %s586_s18, 16  ;;  %s2964_s17 = scalar_lea.vmem %s586_s18, 32 }
  0x86   : > { %p2958_p0 = scmp.ne.s32.totalorder %s586_s18, %s2957_s26  ;;  %p2965_p4 = scmp.lt.s32.totalorder %s586_s18, %s586_s18 }
  0x87   : > { %p2966_p7 = scmp.lt.s32.totalorder %s2964_s17, %s2957_s26 }
  0x88   : > { %p2960_p2 = pnand %p2958_p0, %p3703_p1 }
  0x89   : > { %p2967_p8 = por %p2966_p7, %p2965_p4 }
  0x8a   : > { %p2961_p3 = pneg %p2960_p2 }
  0x8c   : > { %p2968_p12 = pnand %p2967_p8, %p2961_p3 }
  0x8e   : > { %2971 = shalt.err (!%p2968_p12)
}
  0x8f   : > { %2656 = dma.hbm_to_vmem [thread:$0]  (!%p3691_p13), %s4392_s7, 16, %s586_s18, [#allocation17]  }
  0x90   : > { %s2972_s23 = scalar_lea.hbm %s4394_s9, 16 }
  0x91   : > { %p2973_p5 = scmp.ne.s32.totalorder %s4394_s9, %s2972_s23  ;;  %p2979_p10 = scmp.lt.u32.totalorder %s2972_s23, %s4394_s9 }
  0x93   : > { %p2975_p6 = pnand %p2973_p5, %p3703_p1 }
  0x95   : > { %p2976_p9 = pneg %p2975_p6 }
  0x97   : > { %p2981_p11 = pnand %p2979_p10, %p2976_p9 }
  0x99   : > { %2984 = shalt.err (!%p2981_p11)
}
  0x9a   : > { %s2985_s26 = scalar_lea.vmem %s610_s25, 16  ;;  %s2992_s18 = scalar_lea.vmem %s610_s25, 32 }
  0x9b   : > { %p2986_p0 = scmp.ne.s32.totalorder %s610_s25, %s2985_s26  ;;  %p2993_p4 = scmp.lt.s32.totalorder %s610_s25, %s610_s25 }
  0x9c   : > { %p2994_p7 = scmp.lt.s32.totalorder %s2992_s18, %s2985_s26 }
  0x9d   : > { %p2988_p2 = pnand %p2986_p0, %p3703_p1 }
  0x9e   : > { %p2995_p8 = por %p2994_p7, %p2993_p4 }
  0x9f   : > { %p2989_p3 = pneg %p2988_p2 }
  0xa1   : > { %p2996_p12 = pnand %p2995_p8, %p2989_p3 }
  0xa3   : > { %2999 = shalt.err (!%p2996_p12)
}
  0xa4   : > { %2662 = dma.hbm_to_vmem [thread:$0]  (!%p3691_p13), %s4394_s9, 16, %s610_s25, [#allocation20]  }
  0xa5   : > { %s3509_s30 = smov [#allocation22]   ;;  %s3510_s19 = smov [#allocation25]  }
  0xa6   : > { %s633_s21 = sshll.u32 %s3509_s30, 4  ;;  %s657_s23 = sshll.u32 %s3510_s19, 4  ;;  %s634_s21 = int_to_ptr.vmem [resolvable:$true] %s633_s21  ;;  %s658_s23 = int_to_ptr.vmem [resolvable:$true] %s657_s23 }
  0xa7   : > { %s3000_s16 = scalar_lea.hbm %s4396_s11, 16 }
  0xa8   : > { %p3001_p5 = scmp.ne.s32.totalorder %s4396_s11, %s3000_s16  ;;  %p3007_p10 = scmp.lt.u32.totalorder %s3000_s16, %s4396_s11 }
  0xaa   : > { %p3003_p6 = pnand %p3001_p5, %p3703_p1 }
  0xac   : > { %p3004_p9 = pneg %p3003_p6 }
  0xae   : > { %p3009_p11 = pnand %p3007_p10, %p3004_p9 }
  0xb0   : > { %3012 = shalt.err (!%p3009_p11)
}
  0xb1   : > { %s3013_s25 = scalar_lea.vmem %s634_s21, 16  ;;  %s3020_s0 = scalar_lea.vmem %s634_s21, 32 }
  0xb2   : > { %p3014_p0 = scmp.ne.s32.totalorder %s634_s21, %s3013_s25  ;;  %p3021_p4 = scmp.lt.s32.totalorder %s634_s21, %s634_s21 }
  0xb3   : > { %p3022_p7 = scmp.lt.s32.totalorder %s3020_s0, %s3013_s25 }
  0xb4   : > { %p3016_p2 = pnand %p3014_p0, %p3703_p1 }
  0xb5   : > { %p3023_p8 = por %p3022_p7, %p3021_p4 }
  0xb6   : > { %p3017_p3 = pneg %p3016_p2 }
  0xb8   : > { %p3024_p12 = pnand %p3023_p8, %p3017_p3 }
  0xba   : > { %3027 = shalt.err (!%p3024_p12)
}
  0xbb   : > { %2668 = dma.hbm_to_vmem [thread:$0]  (!%p3691_p13), %s4396_s11, 16, %s634_s21, [#allocation23]  }
  0xbc   : > { %s3028_s16 = scalar_lea.hbm %s4398_s13, 16 }
  0xbd   : > { %p3029_p5 = scmp.ne.s32.totalorder %s4398_s13, %s3028_s16  ;;  %p3035_p10 = scmp.lt.u32.totalorder %s3028_s16, %s4398_s13 }
  0xbf   : > { %p3031_p6 = pnand %p3029_p5, %p3703_p1 }
  0xc1   : > { %p3032_p9 = pneg %p3031_p6 }
  0xc3   : > { %p3037_p11 = pnand %p3035_p10, %p3032_p9 }
  0xc5   : > { %3040 = shalt.err (!%p3037_p11)
}
  0xc6   : > { %s3041_s25 = scalar_lea.vmem %s658_s23, 16  ;;  %s3048_s21 = scalar_lea.vmem %s658_s23, 32 }
  0xc7   : > { %p3042_p0 = scmp.ne.s32.totalorder %s658_s23, %s3041_s25  ;;  %p3049_p4 = scmp.lt.s32.totalorder %s658_s23, %s658_s23 }
  0xc8   : > { %p3050_p7 = scmp.lt.s32.totalorder %s3048_s21, %s3041_s25 }
  0xc9   : > { %p3044_p2 = pnand %p3042_p0, %p3703_p1 }
  0xca   : > { %p3051_p8 = por %p3050_p7, %p3049_p4 }
  0xcb   : > { %p3045_p3 = pneg %p3044_p2 }
  0xcd   : > { %p3052_p12 = pnand %p3051_p8, %p3045_p3 }
  0xcf   : > { %3055 = shalt.err (!%p3052_p12)
}
  0xd0   : > { %2674 = dma.hbm_to_vmem [thread:$0]  (!%p3691_p13), %s4398_s13, 16, %s658_s23, [#allocation26]  }
  0xd1   : > { %s3511_s19 = smov [#allocation28]   ;;  %s3512_s29 = smov [#allocation4]  }
  0xd2   : > { %s680_s20 = sshll.u32 %s3511_s19, 4  ;;  %s493_s16 = sshll.u32 %s3512_s29, 4  ;;  %s681_s20 = int_to_ptr.vmem [resolvable:$true] %s680_s20  ;;  %s494_s16 = int_to_ptr.vmem [resolvable:$true] %s493_s16 }
  0xd3   : > { %s3056_s18 = scalar_lea.hbm %s4400_s15, 512 }
  0xd4   : > { %p3057_p5 = scmp.ne.s32.totalorder %s4400_s15, %s3056_s18  ;;  %p3063_p10 = scmp.lt.u32.totalorder %s3056_s18, %s4400_s15 }
  0xd6   : > { %p3059_p6 = pnand %p3057_p5, %p3703_p1 }
  0xd8   : > { %p3060_p9 = pneg %p3059_p6 }
  0xda   : > { %p3065_p11 = pnand %p3063_p10, %p3060_p9 }
  0xdc   : > { %3068 = shalt.err (!%p3065_p11)
}
  0xdd   : > { %s3069_s23 = scalar_lea.vmem %s681_s20, 512  ;;  %p3077_p4 = scmp.lt.s32.totalorder %s681_s20, %s681_s20 }
  0xde   : > { %p3070_p0 = scmp.ne.s32.totalorder %s681_s20, %s3069_s23  ;;  %p3078_p7 = scmp.lt.s32.totalorder %s3069_s23, %s3069_s23 }
  0xe0   : > { %p3072_p2 = pnand %p3070_p0, %p3703_p1  ;;  %p3079_p8 = por %p3078_p7, %p3077_p4 }
  0xe2   : > { %p3073_p3 = pneg %p3072_p2 }
  0xe4   : > { %p3080_p12 = pnand %p3079_p8, %p3073_p3 }
  0xe6   : > { %3083 = shalt.err (!%p3080_p12)
}
  0xe7   : > { %2680 = dma.hbm_to_vmem [thread:$0]  (!%p3691_p13), %s4400_s15, 512, %s681_s20, [#allocation29], %s4431_s1, %s4431_s1, %s4433_s27  }
  0xe8   : > { %s4463_s26 = sld [smem:[#allocation58_spill]] }
  0xee   : > { %s3084_s18 = scalar_lea.hbm %s4463_s26, 512 }
  0xef   : > { %p3085_p5 = scmp.ne.s32.totalorder %s4463_s26, %s3084_s18  ;;  %p3091_p10 = scmp.lt.u32.totalorder %s3084_s18, %s4463_s26 }
  0xf1   : > { %p3087_p6 = pnand %p3085_p5, %p3703_p1 }
  0xf3   : > { %p3088_p9 = pneg %p3087_p6 }
  0xf5   : > { %p3093_p11 = pnand %p3091_p10, %p3088_p9 }
  0xf7   : > { %3096 = shalt.err (!%p3093_p11)
}
  0xf8   : > { %s3097_s23 = scalar_lea.vmem %s494_s16, 512  ;;  %p3105_p4 = scmp.lt.s32.totalorder %s494_s16, %s494_s16 }
  0xf9   : > { %p3098_p0 = scmp.ne.s32.totalorder %s494_s16, %s3097_s23  ;;  %p3106_p7 = scmp.lt.s32.totalorder %s3097_s23, %s3097_s23 }
  0xfb   : > { %p3100_p2 = pnand %p3098_p0, %p3703_p1  ;;  %p3107_p8 = por %p3106_p7, %p3105_p4 }
  0xfd   : > { %p3101_p3 = pneg %p3100_p2 }
  0xff   : > { %p3108_p12 = pnand %p3107_p8, %p3101_p3 }
 0x101   : > { %3111 = shalt.err (!%p3108_p12)
}
 0x102   : > { %s4464_s20 = smov 8   ;;  %s4465_s30 = smov 128  }
 0x103   : > { %2635 = dma.hbm_to_vmem [thread:$0]  (!%p3691_p13), %s4463_s26, 512, %s494_s16, [#allocation5], %s4465_s30, %s4465_s30, %s4464_s20  }
 0x104   : > { %s3513_s24 = smov [#allocation9]   ;;  %s3514_s17 = smov [#allocation12]  }
 0x105   : > { %s519_s18 = sshll.u32 %s3513_s24, 4  ;;  %s545_s25 = sshll.u32 %s3514_s17, 4  ;;  %s520_s18 = int_to_ptr.vmem [resolvable:$true] %s519_s18  ;;  %s546_s25 = int_to_ptr.vmem [resolvable:$true] %s545_s25 }
 0x106   : > { %s4466_s23 = sld [smem:[#allocation60_spill]] }
 0x10c   : > { %s3112_s1 = scalar_lea.hbm %s4466_s23, 128 }
 0x10d   : > { %p3113_p5 = scmp.ne.s32.totalorder %s4466_s23, %s3112_s1  ;;  %p3119_p10 = scmp.lt.u32.totalorder %s3112_s1, %s4466_s23 }
 0x10f   : > { %p3115_p6 = pnand %p3113_p5, %p3703_p1 }
 0x111   : > { %p3116_p9 = pneg %p3115_p6 }
 0x113   : > { %p3121_p11 = pnand %p3119_p10, %p3116_p9 }
 0x115   : > { %3124 = shalt.err (!%p3121_p11)
}
 0x116   : > { %s3125_s16 = scalar_lea.vmem %s520_s18, 128  ;;  %p3133_p4 = scmp.lt.s32.totalorder %s520_s18, %s520_s18 }
 0x117   : > { %p3126_p0 = scmp.ne.s32.totalorder %s520_s18, %s3125_s16  ;;  %p3134_p7 = scmp.lt.s32.totalorder %s3125_s16, %s3125_s16 }
 0x119   : > { %p3128_p2 = pnand %p3126_p0, %p3703_p1  ;;  %p3135_p8 = por %p3134_p7, %p3133_p4 }
 0x11b   : > { %p3129_p3 = pneg %p3128_p2 }
 0x11d   : > { %p3136_p12 = pnand %p3135_p8, %p3129_p3 }
 0x11f   : > { %3139 = shalt.err (!%p3136_p12)
}
 0x120   : > { %s4467_s2 = smov 4   ;;  %s4468_s27 = smov 64  }
 0x121   : > { %2641 = dma.hbm_to_vmem [thread:$0]  (!%p3691_p13), %s4466_s23, 128, %s520_s18, [#allocation8], %s4468_s27, %s4468_s27, %s4467_s2  }
 0x122   : > { %s4469_s4 = sld [smem:[#allocation62_spill]] }
 0x128   : > { %s3140_s29 = scalar_lea.hbm %s4469_s4, 256 }
 0x129   : > { %p3141_p5 = scmp.ne.s32.totalorder %s4469_s4, %s3140_s29  ;;  %p3147_p10 = scmp.lt.u32.totalorder %s3140_s29, %s4469_s4 }
 0x12b   : > { %p3143_p6 = pnand %p3141_p5, %p3703_p1 }
 0x12d   : > { %p3144_p9 = pneg %p3143_p6 }
 0x12f   : > { %p3149_p11 = pnand %p3147_p10, %p3144_p9 }
 0x131   : > { %3152 = shalt.err (!%p3149_p11)
}
 0x132   : > { %s3153_s19 = scalar_lea.vmem %s546_s25, 256  ;;  %p3161_p4 = scmp.lt.s32.totalorder %s546_s25, %s546_s25 }
 0x133   : > { %p3154_p0 = scmp.ne.s32.totalorder %s546_s25, %s3153_s19  ;;  %p3162_p7 = scmp.lt.s32.totalorder %s3153_s19, %s3153_s19 }
 0x135   : > { %p3156_p2 = pnand %p3154_p0, %p3703_p1  ;;  %p3163_p8 = por %p3162_p7, %p3161_p4 }
 0x137   : > { %p3157_p3 = pneg %p3156_p2 }
 0x139   : > { %p3164_p12 = pnand %p3163_p8, %p3157_p3 }
 0x13b   : > { %3167 = shalt.err (!%p3164_p12)
}
 0x13c   : > { %2647 = dma.hbm_to_vmem [thread:$0]  (!%p3691_p13), %s4469_s4, 256, %s546_s25, [#allocation11], %s4468_s27, %s4468_s27, %s4467_s2  }
 0x13d   : > { %s3515_s3 = smov [#allocation15]   ;;  %s3516_s20 = smov [#allocation18]  }
 0x13e   : > { %s571_s1 = sshll.u32 %s3515_s3, 4  ;;  %s595_s30 = sshll.u32 %s3516_s20, 4  ;;  %s572_s1 = int_to_ptr.vmem [resolvable:$true] %s571_s1  ;;  %s596_s30 = int_to_ptr.vmem [resolvable:$true] %s595_s30 }
 0x13f   : > { %s3168_s17 = scalar_lea.hbm %s4391_s6, 256 }
 0x140   : > { %p3169_p5 = scmp.ne.s32.totalorder %s4391_s6, %s3168_s17  ;;  %p3175_p10 = scmp.lt.u32.totalorder %s3168_s17, %s4391_s6 }
 0x142   : > { %p3171_p6 = pnand %p3169_p5, %p3703_p1 }
 0x144   : > { %p3172_p9 = pneg %p3171_p6 }
 0x146   : > { %p3177_p11 = pnand %p3175_p10, %p3172_p9 }
 0x148   : > { %3180 = shalt.err (!%p3177_p11)
}
 0x149   : > { %s3181_s25 = scalar_lea.vmem %s572_s1, 256  ;;  %p3189_p4 = scmp.lt.s32.totalorder %s572_s1, %s572_s1 }
 0x14a   : > { %p3182_p0 = scmp.ne.s32.totalorder %s572_s1, %s3181_s25  ;;  %p3190_p7 = scmp.lt.s32.totalorder %s3181_s25, %s3181_s25 }
 0x14c   : > { %p3184_p2 = pnand %p3182_p0, %p3703_p1  ;;  %p3191_p8 = por %p3190_p7, %p3189_p4 }
 0x14e   : > { %p3185_p3 = pneg %p3184_p2 }
 0x150   : > { %p3192_p12 = pnand %p3191_p8, %p3185_p3 }
 0x152   : > { %3195 = shalt.err (!%p3192_p12)
}
 0x153   : > { %2653 = dma.hbm_to_vmem [thread:$0]  (!%p3691_p13), %s4391_s6, 256, %s572_s1, [#allocation14], %s4468_s27, %s4468_s27, %s4467_s2  }
 0x154   : > { %s3196_s24 = scalar_lea.hbm %s4393_s8, 256 }
 0x155   : > { %p3197_p5 = scmp.ne.s32.totalorder %s4393_s8, %s3196_s24  ;;  %p3203_p10 = scmp.lt.u32.totalorder %s3196_s24, %s4393_s8 }
 0x157   : > { %p3199_p6 = pnand %p3197_p5, %p3703_p1 }
 0x159   : > { %p3200_p9 = pneg %p3199_p6 }
 0x15b   : > { %p3205_p11 = pnand %p3203_p10, %p3200_p9 }
 0x15d   : > { %3208 = shalt.err (!%p3205_p11)
}
 0x15e   : > { %s3209_s18 = scalar_lea.vmem %s596_s30, 256  ;;  %p3217_p4 = scmp.lt.s32.totalorder %s596_s30, %s596_s30 }
 0x15f   : > { %p3210_p0 = scmp.ne.s32.totalorder %s596_s30, %s3209_s18  ;;  %p3218_p7 = scmp.lt.s32.totalorder %s3209_s18, %s3209_s18 }
 0x161   : > { %p3212_p2 = pnand %p3210_p0, %p3703_p1  ;;  %p3219_p8 = por %p3218_p7, %p3217_p4 }
 0x163   : > { %p3213_p3 = pneg %p3212_p2 }
 0x165   : > { %p3220_p12 = pnand %p3219_p8, %p3213_p3 }
 0x167   : > { %3223 = shalt.err (!%p3220_p12)
}
 0x168   : > { %2659 = dma.hbm_to_vmem [thread:$0]  (!%p3691_p13), %s4393_s8, 256, %s596_s30, [#allocation17], %s4468_s27, %s4468_s27, %s4467_s2  }
 0x169   : > { %s3517_s16 = smov [#allocation21]   ;;  %s3518_s20 = smov [#allocation24]  }
 0x16a   : > { %s619_s3 = sshll.u32 %s3517_s16, 4  ;;  %s643_s29 = sshll.u32 %s3518_s20, 4  ;;  %s620_s3 = int_to_ptr.vmem [resolvable:$true] %s619_s3  ;;  %s644_s29 = int_to_ptr.vmem [resolvable:$true] %s643_s29 }
 0x16b   : > { %s3224_s21 = scalar_lea.hbm %s4395_s10, 512 }
 0x16c   : > { %p3225_p5 = scmp.ne.s32.totalorder %s4395_s10, %s3224_s21  ;;  %p3231_p10 = scmp.lt.u32.totalorder %s3224_s21, %s4395_s10 }
 0x16e   : > { %p3227_p6 = pnand %p3225_p5, %p3703_p1 }
 0x170   : > { %p3228_p9 = pneg %p3227_p6 }
 0x172   : > { %p3233_p11 = pnand %p3231_p10, %p3228_p9 }
 0x174   : > { %3236 = shalt.err (!%p3233_p11)
}
 0x175   : > { %s3237_s30 = scalar_lea.vmem %s620_s3, 512  ;;  %p3245_p4 = scmp.lt.s32.totalorder %s620_s3, %s620_s3 }
 0x176   : > { %p3238_p0 = scmp.ne.s32.totalorder %s620_s3, %s3237_s30  ;;  %p3246_p7 = scmp.lt.s32.totalorder %s3237_s30, %s3237_s30 }
 0x178   : > { %p3240_p2 = pnand %p3238_p0, %p3703_p1  ;;  %p3247_p8 = por %p3246_p7, %p3245_p4 }
 0x17a   : > { %p3241_p3 = pneg %p3240_p2 }
 0x17c   : > { %p3248_p12 = pnand %p3247_p8, %p3241_p3 }
 0x17e   : > { %3251 = shalt.err (!%p3248_p12)
}
 0x17f   : > { %2665 = dma.hbm_to_vmem [thread:$0]  (!%p3691_p13), %s4395_s10, 512, %s620_s3, [#allocation20], %s4468_s27, %s4468_s27, %s4467_s2  }
 0x180   : > { %s3252_s17 = scalar_lea.hbm %s4397_s12, 512 }
 0x181   : > { %p3253_p5 = scmp.ne.s32.totalorder %s4397_s12, %s3252_s17  ;;  %p3259_p10 = scmp.lt.u32.totalorder %s3252_s17, %s4397_s12 }
 0x183   : > { %p3255_p6 = pnand %p3253_p5, %p3703_p1 }
 0x185   : > { %p3256_p9 = pneg %p3255_p6 }
 0x187   : > { %p3261_p11 = pnand %p3259_p10, %p3256_p9 }
 0x189   : > { %3264 = shalt.err (!%p3261_p11)
}
 0x18a   : > { %s3265_s1 = scalar_lea.vmem %s644_s29, 512  ;;  %p3273_p4 = scmp.lt.s32.totalorder %s644_s29, %s644_s29 }
 0x18b   : > { %p3266_p0 = scmp.ne.s32.totalorder %s644_s29, %s3265_s1  ;;  %p3274_p7 = scmp.lt.s32.totalorder %s3265_s1, %s3265_s1 }
 0x18d   : > { %p3268_p2 = pnand %p3266_p0, %p3703_p1  ;;  %p3275_p8 = por %p3274_p7, %p3273_p4 }
 0x18f   : > { %p3269_p3 = pneg %p3268_p2 }
 0x191   : > { %p3276_p12 = pnand %p3275_p8, %p3269_p3 }
 0x193   : > { %3279 = shalt.err (!%p3276_p12)
}
 0x194   : > { %2671 = dma.hbm_to_vmem [thread:$0]  (!%p3691_p13), %s4397_s12, 512, %s644_s29, [#allocation23], %s4468_s27, %s4468_s27, %s4467_s2  }
 0x195   : > { %s3519_s25 = smov [#allocation27]   ;;  %s3520_s20 = smov [#allocation30]  }
 0x196   : > { %s667_s16 = sshll.u32 %s3519_s25, 4  ;;  %s693_s24 = sshll.u32 %s3520_s20, 4  ;;  %s668_s16 = int_to_ptr.vmem [resolvable:$true] %s667_s16  ;;  %s694_s24 = int_to_ptr.vmem [resolvable:$true] %s693_s24 }
 0x197   : > { %s3280_s0 = scalar_lea.hbm %s4399_s14, 1024 }
 0x198   : > { %p3281_p5 = scmp.ne.s32.totalorder %s4399_s14, %s3280_s0  ;;  %p3287_p10 = scmp.lt.u32.totalorder %s3280_s0, %s4399_s14 }
 0x19a   : > { %p3283_p6 = pnand %p3281_p5, %p3703_p1 }
 0x19c   : > { %p3284_p9 = pneg %p3283_p6 }
 0x19e   : > { %p3289_p11 = pnand %p3287_p10, %p3284_p9 }
 0x1a0   : > { %3292 = shalt.err (!%p3289_p11)
}
 0x1a1   : > { %s3293_s29 = scalar_lea.vmem %s668_s16, 1024  ;;  %p3301_p4 = scmp.lt.s32.totalorder %s668_s16, %s668_s16 }
 0x1a2   : > { %p3294_p0 = scmp.ne.s32.totalorder %s668_s16, %s3293_s29  ;;  %p3302_p7 = scmp.lt.s32.totalorder %s3293_s29, %s3293_s29 }
 0x1a4   : > { %p3296_p2 = pnand %p3294_p0, %p3703_p1  ;;  %p3303_p8 = por %p3302_p7, %p3301_p4 }
 0x1a6   : > { %p3297_p3 = pneg %p3296_p2 }
 0x1a8   : > { %p3304_p12 = pnand %p3303_p8, %p3297_p3 }
 0x1aa   : > { %3307 = shalt.err (!%p3304_p12)
}
 0x1ab   : > { %2677 = dma.hbm_to_vmem [thread:$0]  (!%p3691_p13), %s4399_s14, 1024, %s668_s16, [#allocation26], %s4468_s27, %s4468_s27, %s4467_s2  }
 0x1ac   : > { %s4470_s21 = sld [smem:[#allocation63_spill]] }
 0x1b2   : > { %s4471_s19 = smov %s4470_s21  ;;  %s3308_s0 = scalar_lea.hbm %s4470_s21, 32 }
 0x1b3   : > { %p3309_p5 = scmp.ne.s32.totalorder %s4471_s19, %s3308_s0  ;;  %p3315_p10 = scmp.lt.u32.totalorder %s3308_s0, %s4471_s19 }
 0x1b5   : > { %p3311_p6 = pnand %p3309_p5, %p3703_p1 }
 0x1b7   : > { %p3312_p9 = pneg %p3311_p6 }
 0x1b9   : > { %p3317_p11 = pnand %p3315_p10, %p3312_p9 }
 0x1bb   : > { %3320 = shalt.err (!%p3317_p11)
}
 0x1bc   : > { %s3321_s30 = scalar_lea.vmem %s694_s24, 32  ;;  %p3329_p4 = scmp.lt.s32.totalorder %s694_s24, %s694_s24 }
 0x1bd   : > { %p3322_p0 = scmp.ne.s32.totalorder %s694_s24, %s3321_s30  ;;  %p3330_p7 = scmp.lt.s32.totalorder %s3321_s30, %s3321_s30 }
 0x1bf   : > { %p3324_p2 = pnand %p3322_p0, %p3703_p1  ;;  %p3331_p8 = por %p3330_p7, %p3329_p4 }
 0x1c1   : > { %p3325_p3 = pneg %p3324_p2 }
 0x1c3   : > { %p3332_p12 = pnand %p3331_p8, %p3325_p3 }
 0x1c5   : > { %3335 = shalt.err (!%p3332_p12)
}
 0x1c6   : > { %s3521_s2 = smov 16   ;;  %s3522_s27 = smov 1  }
 0x1c7   : > { %2683 = dma.hbm_to_vmem [thread:$0]  (!%p3691_p13), %s4471_s19, 32, %s694_s24, [#allocation29], %s3521_s2, %s3521_s2, %s3522_s27  }
 0x1c8   : > { %s3523_s20 = smov [#allocation31]   ;;  %s4472_s18 = sld [smem:[#allocation64_spill]] }
 0x1c9   : > { %s706_s17 = sshll.u32 %s3523_s20, 4  ;;  %s707_s17 = int_to_ptr.vmem [resolvable:$true] %s706_s17 }
 0x1ce   : > { %s3336_s1 = scalar_lea.hbm %s4472_s18, 32 }
 0x1cf   : > { %p3337_p5 = scmp.ne.s32.totalorder %s4472_s18, %s3336_s1  ;;  %p3343_p10 = scmp.lt.u32.totalorder %s3336_s1, %s4472_s18 }
 0x1d1   : > { %p3339_p6 = pnand %p3337_p5, %p3703_p1 }
 0x1d3   : > { %p3340_p9 = pneg %p3339_p6 }
 0x1d5   : > { %p3345_p11 = pnand %p3343_p10, %p3340_p9 }
 0x1d7   : > { %3348 = shalt.err (!%p3345_p11)
}
 0x1d8   : > { %s3349_s24 = scalar_lea.vmem %s707_s17, 32  ;;  %p3357_p4 = scmp.lt.s32.totalorder %s707_s17, %s707_s17 }
 0x1d9   : > { %p3350_p0 = scmp.ne.s32.totalorder %s707_s17, %s3349_s24  ;;  %p3358_p7 = scmp.lt.s32.totalorder %s3349_s24, %s3349_s24 }
 0x1db   : > { %p3352_p2 = pnand %p3350_p0, %p3703_p1  ;;  %p3359_p8 = por %p3358_p7, %p3357_p4 }
 0x1dd   : > { %p3353_p3 = pneg %p3352_p2 }
 0x1df   : > { %p3360_p12 = pnand %p3359_p8, %p3353_p3 }
 0x1e1   : > { %3363 = shalt.err (!%p3360_p12)
}
 0x1e2   : > { %2686 = dma.hbm_to_vmem [thread:$0]  (!%p3691_p13), %s4472_s18, 32, %s707_s17, [#allocation32], %s3521_s2, %s3521_s2, %s3522_s27  }
 0x1e3   : > { %s4473_s4 = sld [smem:[#allocation57_spill]] }
 0x1e9   : > { %p4474_p5 = scmp.ne.s32.totalorder %s4473_s4, 0 }
 0x1ea   : > { %s4475_s20 = sld [smem:[#allocation52_spill]] (!%p4474_p5) }
 0x1eb   : > { %722 = sbr.rel (%p4474_p5) target bundleno = 1951 (0x79f), region = 92 }
 0x1f0   : > { %p4476_p6 = scmp.eq.s32.totalorder (!%p4474_p5), %s4475_s20, 0 }
 0x1f2   : > { %3437 = dma.done.wait (%p4476_p6), [#allocation5], 512   ;;  %p4477_p1 = pmov %p4476_p6 }
 0x1f4   : > { %3439 = vsyncadd (%p4477_p1), [#allocation5], 4294966784  ;;  %p4478_p9 = pmov %p4477_p1 }
 0x1f5   : > { %p4479_p10 = pmov %p4477_p1 }
 0x1f6   : > { %3441 = dma.done.wait (%p4478_p9), [#allocation8], 384  }
 0x1f7   : > { %3443 = vsyncadd (%p4479_p10), [#allocation8], 4294966912  ;;  %p4480_p11 = pmov %p4477_p1 }
 0x1f8   : > { %p4481_p13 = pmov %p4477_p1 }
 0x1f9   : > { %3445 = dma.done.wait (%p4480_p11), [#allocation11], 384  }
 0x1fa   : > { %3447 = vsyncadd (%p4481_p13), [#allocation11], 4294966912  ;;  %p4482_p0 = pmov %p4477_p1 }
 0x1fc   : > { %3449 = dma.done.wait (%p4482_p0), [#allocation14], 512   ;;  %p4483_p2 = pmov %p4482_p0 }
 0x1fd   : > { %p4484_p3 = pmov %p4482_p0 }
 0x1fe   : > { %3451 = vsyncadd (%p4483_p2), [#allocation14], 4294966784 }
 0x1ff   : > { %3453 = dma.done.wait (%p4484_p3), [#allocation17], 272   ;;  %p4485_p4 = pmov %p4482_p0 }
 0x200   : > { %p4486_p7 = pmov %p4482_p0 }
 0x201   : > { %3455 = vsyncadd (%p4485_p4), [#allocation17], 4294967024 }
 0x202   : > { %3457 = dma.done.wait (%p4486_p7), [#allocation20], 528   ;;  %p4487_p8 = pmov %p4482_p0 }
 0x203   : > { %p4488_p12 = pmov %p4482_p0 }
 0x204   : > { %3459 = vsyncadd (%p4487_p8), [#allocation20], 4294966768 }
 0x205   : > { %3461 = dma.done.wait (%p4488_p12), [#allocation23], 528   ;;  %p4489_p5 = pmov %p4482_p0 }
 0x206   : > { %p4490_p6 = pmov %p4482_p0 }
 0x207   : > { %3463 = vsyncadd (%p4489_p5), [#allocation23], 4294966768 }
 0x208   : > { %3465 = dma.done.wait (%p4490_p6), [#allocation26], 1040   ;;  %p4491_p1 = pmov %p4482_p0 }
 0x209   : > { %p4492_p9 = pmov %p4482_p0 }
 0x20a   : > { %3467 = vsyncadd (%p4491_p1), [#allocation26], 4294966256 }
 0x20b   : > { %3469 = dma.done.wait (%p4492_p9), [#allocation29], 544   ;;  %p4493_p10 = pmov %p4482_p0 }
 0x20c   : > { %p4494_p11 = pmov %p4482_p0 }
 0x20d   : > { %3471 = vsyncadd (%p4493_p10), [#allocation29], 4294966752 }
 0x20e   : > { %3473 = dma.done.wait (%p4494_p11), [#allocation32], 32   ;;  %p4495_p13 = pmov %p4482_p0 }
 0x20f   : > { %s4496_s22 = sld [smem:[#allocation49_spill]]  ;;  %p4497_p0 = scmp.ne.s32.totalorder %s4475_s20, 0 }
 0x210   : > { %3475 = vsyncadd (%p4495_p13), [#allocation32], 4294967264  ;;  %v851_v0 = vld [vmem:[#allocation4] sm:$0xff] (!%p4497_p0)  ;;  %vm855_vm0 = vcmask (!%p4497_p0), 261120   ;;  %v852_v1 = vld [vmem:[#allocation4 + $0x8] sm:$0xff] (!%p4497_p0) }
 0x211   : > { %850 = sbr.rel (%p4497_p0) target bundleno = 536 (0x218), region = 168  ;;  %v853_v2 = vld [vmem:[#allocation4 + $0x10] sm:$0xff] (!%p4497_p0)  ;;  %856 = vst.msk [vmem:[#allocation2] sm:$0xff] (!%p4497_p0), %vm855_vm0, %v851_v0  ;;  %857 = vst.msk [vmem:[#allocation2 + $0x8] sm:$0xff] (!%p4497_p0), %vm855_vm0, %v852_v1  ;;  %v854_v3 = vld [vmem:[#allocation4 + $0x18] sm:$0xff] (!%p4497_p0) }
 0x212   : > { %858 = vst.msk [vmem:[#allocation2 + $0x10] sm:$0xff] (!%p4497_p0), %vm855_vm0, %v853_v2  ;;  %v860_v4 = vld [vmem:[#allocation7] sm:$0xff] (!%p4497_p0)  ;;  %v861_v5 = vld [vmem:[#allocation7 + $0x8] sm:$0xff] (!%p4497_p0)  ;;  %859 = vst.msk [vmem:[#allocation2 + $0x18] sm:$0xff] (!%p4497_p0), %vm855_vm0, %v854_v3 }
 0x213   : > { %862 = vst.msk [vmem:[#allocation3] sm:$0xff] (!%p4497_p0), %vm855_vm0, %v860_v4  ;;  %863 = vst.msk [vmem:[#allocation3 + $0x8] sm:$0xff] (!%p4497_p0), %vm855_vm0, %v861_v5 }
 0x215   : > { %s4104_s28 = sand.u32 1, %s4496_s22  }
 0x216   : > { %s2325_s2 = sshll.u32 %s4104_s28, 5  ;;  %s2326_s27 = sshll.u32 %s4104_s28, 4 }
 0x217   : > { %s4108_s17 = scalar_lea.vmem [#allocation33], %s2325_s2  ;;  %s4110_s21 = scalar_lea.vmem [#allocation34], %s2326_s27 }
 0x218 PF: > { %v2794_v6 = vld [vmem:[#allocation15] sm:$0xff]   ;;  %v2795_v7 = vld [vmem:[#allocation15 + $0x8] sm:$0xff]   ;;  %v4114_v8 = vld [vmem:[#allocation2] sm:$0xff]  ;;  %vm895_vm1 = vcmask 261120   ;;  %v3524_v17 = vmov 0.0   ;;  %vm3525_vm2 = vmmov 0  }
 0x219   : > { %2448 = vmatprep.subr.bf16.mxu0 %v2794_v6  ;;  %v4116_v9 = vld [vmem:[#allocation2 + $0x8] sm:$0xff]  ;;  %v4118_v10 = vld [vmem:[#allocation2 + $0x10] sm:$0xff]  ;;  %v4124_v12 = vld [vmem:[#allocation2 + $0x18] sm:$0xff]  ;;  %vm996_vm3 = vcmask 523264   ;;  %vm1334_vm4 = vcmask 130048   ;;  %s3526_s0 = smov 64  }
 0x21a   : > { %2449 = vmatpush3.bf16.msra.mxu0 %v2794_v6  ;;  %v4122_v11 = vpack.c.bf16 %v4116_v9, %v4114_v8  ;;  %v2796_v13 = vld [vmem:[#allocation18] sm:$0xff]   ;;  %v4130_v14 = vpack.c.bf16 %v4124_v12, %v4118_v10  ;;  %v2798_v15 = vld [vmem:[#allocation21] sm:$0xff]   ;;  %v2797_v18 = vld [vmem:[#allocation18 + $0x8] sm:$0xff]   ;;  %s3527_s1 = smov 32   ;;  %s3528_s3 = smov 96  }
 0x21b   : > { %2450 = vmatprep.subr.bf16.mxu0 %v2795_v7  ;;  %v2799_v16 = vld [vmem:[#allocation21 + $0x8] sm:$0xff]   ;;  %2456 = vmatprep.subr.bf16.mxu1 %v2798_v15  ;;  %v4135_v20 = vld [vmem:[#allocation3 + $0x8] sm:$0xff]  ;;  %v2340_v41 = vld [vmem:[#allocation19] ss:$0 sm:$0xff]  ;;  %s4498_s29 = sld [smem:[#allocation52_spill]]  ;;  %s4499_s30 = sld [smem:[#allocation55_spill]] }
 0x21c   : > { %2452 = vmatprep.mubr.msk.bf16.mxu0 %vm895_vm1, %v4122_v11  ;;  %v4133_v19 = vld [vmem:[#allocation3] sm:$0xff]  ;;  %2457 = vmatpush3.bf16.msra.mxu1 %v2798_v15  ;;  %v2801_v23 = vld [vmem:[#allocation21 + $0x18] sm:$0xff]   ;;  %v2802_v24 = vld [vmem:[#allocation24] sm:$0xff]   ;;  %s2030_s16 = sshll.u32 %s4110_s21, 4  ;;  %s4500_s20 = sld [smem:[#allocation66_spill]]  ;;  %s4288_s16 = int_to_ptr.vmem [resolvable:$true] %s2030_s16 }
 0x21d   : > { %2458 = vmatprep.subr.bf16.mxu1 %v2799_v16  ;;  %v4144_v21 = vpack.c.bf16 %v4135_v20, %v4133_v19  ;;  %v2800_v22 = vld [vmem:[#allocation21 + $0x10] sm:$0xff]   ;;  %v2805_v27 = vld [vmem:[#allocation24 + $0x18] sm:$0xff]   ;;  %v2328_v28 = vld [vmem:[#allocation16] ss:$0 sm:$0xff]  ;;  %s2001_s27 = scalar_lea.sflag [#allocation35], %s4104_s28 }
 0x21e   : > { %2451 = vmatpush3.bf16.msra.mxu0 %v2795_v7  ;;  %v2803_v25 = vld [vmem:[#allocation24 + $0x8] sm:$0xff]   ;;  %v2804_v26 = vld [vmem:[#allocation24 + $0x10] sm:$0xff]   ;;  %v2808_v53 = vld [vmem:[#allocation12] sm:$0xff]  }
 0x21f   : > { %2468 = vmatprep.subr.bf16.mxu0 %v3524_v17  ;;  %v2333_v55 = vld [vmem:[#allocation22] ss:$0 sm:$0xff]  ;;  %v2344_v63 = vld [vmem:[#allocation25] ss:$0 sm:$0xff] }
 0x220   : > { %2459 = vmatpush3.bf16.msra.mxu1 %v2799_v16  ;;  %v2810_v16 = vld [vmem:[#allocation12 + $0x8] sm:$0xff]  }
 0x221   : > { %2453 = vmatmul.mubr.msk.bf16.vlgmr.msra.gmra.mrb[0].mxu0 %vm895_vm1, %v4130_v14  ;;  %2460 = vmatprep.subr.bf16.mxu1 %v2800_v22  ;;  %s2399_s24 = sshll.u32 %s4498_s29, 8  ;;  %p4502_p3 = scmp.ne.s32.totalorder %s4499_s30, 0 }
 0x222   : > { %2469 = vmatpush3.bf16.msra.mxu0 %v2796_v13  ;;  %2472 = vmatprep.mubr.msk.bf16.mxu0 %vm3525_vm2, %v3524_v17  ;;  %v2806_v13 = vld [vmem:[#allocation9] sm:$0xff]   ;;  %s4501_s22 = smov %s4500_s20  ;;  %s4286_s2 = scalar_lea.hbm %s4500_s20, %s2399_s24 }
 0x223   : > { %2470 = vmatprep.subr.bf16.mxu0 %v3524_v17 }
 0x224   : > { %2461 = vmatpush3.bf16.msra.mxu1 %v2800_v22  ;;  %v2807_v22 = vld [vmem:[#allocation10] sm:$0xff]  }
 0x225   : > { %2462 = vmatprep.subr.bf16.mxu1 %v2801_v23 }
 0x226   : > { %2471 = vmatpush3.bf16.msra.mxu0 %v2797_v18  ;;  %v2814_v18 = vld [vmem:[#allocation27] sm:$0xff]  }
 0x227   : > { %2476 = vmatprep.subr.bf16.mxu0 %v3524_v17 }
 0x228   : > { %2463 = vmatpush3.bf16.msra.mxu1 %v2801_v23  ;;  %v2809_v23 = vld [vmem:[#allocation13] sm:$0xff]  }
 0x229   : > { %2473 = vmatmul.mubr.msk.bf16.vlgmr.msra.gmra.mrb[4].mxu0 %vm895_vm1, %v4144_v21  ;;  %2488 = vmatprep.subr.bf16.mxu1 %v3524_v17 }
 0x22a   : > { %2484 = vmatprep.mubr.msk.bf16.mxu0 %vm3525_vm2, %v3524_v17  ;;  %2477 = vmatpush3.bf16.msra.mxu0 %v2802_v24  ;;  %v2811_v24 = vld [vmem:[#allocation13 + $0x8] sm:$0xff]  }
 0x22b   : > { %2478 = vmatprep.subr.bf16.mxu0 %v3524_v17 }
 0x22e   : > { %2479 = vmatpush3.bf16.msra.mxu0 %v2803_v25  ;;  %v2812_v25 = vld [vmem:[#allocation28] sm:$0xff]  }
 0x22f   : > { %2480 = vmatprep.subr.bf16.mxu0 %v3524_v17 }
 0x232   : > { %2481 = vmatpush3.bf16.msra.mxu0 %v2804_v26  ;;  %v2813_v26 = vld [vmem:[#allocation28 + $0x8] sm:$0xff]  }
 0x233   : > { %2482 = vmatprep.subr.bf16.mxu0 %v3524_v17 }
 0x236   : > { %2483 = vmatpush3.bf16.msra.mxu0 %v2805_v27  ;;  %v2815_v27 = vld [vmem:[#allocation27 + $0x8] sm:$0xff]  }
 0x2f4   : > { %v2454_v29 = vpop.f32.mrb[0].mxu0 }
 0x2f5   : > { %v945_v30 = vadd.f32 %v2454_v29, %v2328_v28  ;;  %v936_v31 = vpop.f32.mrb[1].mxu0  ;;  %v2817_v29 = vld [vmem:[#allocation27 + $0x20] sm:$0xff]  }
 0x2f6   : > { %v937_v32 = vadd.f32 %v2328_v28, %v936_v31  ;;  %v2455_v33 = vpop.f32.mrb[2].mxu0  ;;  %v2819_v31 = vld [vmem:[#allocation27 + $0x28] sm:$0xff]  }
 0x2f7   : > { %v948_v34 = vadd.f32 %v2455_v33, %v2328_v28  ;;  %v939_v35 = vpop.f32.mrb[3].mxu0  ;;  %v953_v37 = vmax.f32 %v945_v30, 0.0  ;;  %v2818_v30 = vld [vmem:[#allocation27 + $0x18] sm:$0xff]   ;;  %v2821_v33 = vld [vmem:[#allocation27 + $0x30] sm:$0xff]  }
 0x2f8   : > { %v940_v36 = vadd.f32 %v2328_v28, %v939_v35  ;;  %v951_v39 = vmax.f32 %v937_v32, 0.0  ;;  %v2816_v28 = vld [vmem:[#allocation27 + $0x10] sm:$0xff]  }
 0x2f9   : > { %v954_v38 = vmax.f32 %v948_v34, 0.0  ;;  %v2820_v32 = vld [vmem:[#allocation28 + $0x10] sm:$0xff]   ;;  %v1311_v34 = vlaneseq }
 0x2fa   : > { %v952_v40 = vmax.f32 %v940_v36, 0.0 }
 0x2fb   : > { %v956_v42 = vpack.c.bf16 %v954_v38, %v953_v37  ;;  %v1312_v38 = vand.u32 127, %v1311_v34 }
 0x2fc   : > { %v955_v43 = vpack.c.bf16 %v952_v40, %v951_v39  ;;  %v1115_v44 = vpop.f32.mrb[4].mxu0 }
 0x2fd   : > { %v1116_v45 = vadd.f32 %v2340_v41, %v1115_v44  ;;  %v2474_v46 = vpop.f32.mrb[5].mxu0  ;;  %vm1313_vm5 = vcmp.lt.s32.totalorder %v1312_v38, 32 }
 0x2fe   : > { %2464 = vmatprep.mubr.msk.bf16.mxu1 %vm996_vm3, %v955_v43  ;;  %v1118_v47 = vpop.f32.mrb[6].mxu0 }
 0x2ff   : > { %2465 = vmatmul.mubr.msk.bf16.vlgmr.msra.gmra.mrb[0].mxu1 %vm996_vm3, %v956_v42  ;;  %v1122_v48 = vmax.f32 %v1116_v45, 0.0  ;;  %v1119_v49 = vadd.f32 %v2340_v41, %v1118_v47  ;;  %v2475_v50 = vpop.f32.mrb[7].mxu0 }
 0x300   : > { %2492 = vmatprep.mubr.msk.bf16.mxu1 %vm3525_vm2, %v3524_v17  ;;  %v2822_v50 = vld [vmem:[#allocation28 + $0x18] sm:$0xff]  }
 0x301   : > { %v1123_v51 = vmax.f32 %v1119_v49, 0.0 }
 0x303   : > { %v1124_v52 = vpack.c.bf16 %v1123_v51, %v1122_v48 }
 0x305   : > { %2485 = vmatmul.mubr.msk.bf16.vlgmr.msra.gmra.mrb[8].mxu0 %vm996_vm3, %v1124_v52 }
 0x306   : > { %2506 = vmatprep.mubr.msk.bf16.mxu0 %vm1334_vm4, %v2808_v53 }
 0x3d2   : > { %v2466_v54 = vpop.f32.mrb[0].mxu1 }
 0x3d3   : > { %v1037_v56 = vpop.f32.mrb[1].mxu1  ;;  %v1046_v58 = vadd.f32 %v2466_v54, %v2333_v55 }
 0x3d4   : > { %v2467_v57 = vpop.f32.mrb[2].mxu1  ;;  %v1038_v61 = vadd.f32 %v2333_v55, %v1037_v56 }
 0x3d5   : > { %v1049_v59 = vadd.f32 %v2467_v57, %v2333_v55  ;;  %v1040_v60 = vpop.f32.mrb[3].mxu1 }
 0x3d6   : > { %v1041_v62 = vadd.f32 %v2333_v55, %v1040_v60 }
 0x3d7   : > { %v1053_v0 = vpack.c.bf16 %v1049_v59, %v1046_v58 }
 0x3d8   : > { %v1052_v1 = vpack.c.bf16 %v1041_v62, %v1038_v61  ;;  %v1201_v2 = vpop.f32.mrb[8].mxu0 }
 0x3d9   : > { %v1202_v3 = vadd.f32 %v2344_v63, %v1201_v2  ;;  %v2486_v4 = vpop.f32.mrb[9].mxu0 }
 0x3da   : > { %2489 = vmatpush3.bf16.msra.mxu1 %v1052_v1  ;;  %v1204_v5 = vpop.f32.mrb[10].mxu0 }
 0x3db   : > { %2490 = vmatprep.subr.bf16.mxu1 %v3524_v17  ;;  %v1205_v6 = vadd.f32 %v2344_v63, %v1204_v5  ;;  %v2487_v7 = vpop.f32.mrb[11].mxu0 }
 0x3dd   : > { %v1208_v15 = vpack.c.bf16 %v1205_v6, %v1202_v3  ;;  %v2362_v3 = vld [vmem:[#allocation30] ss:$0 sm:$0xff] }
 0x3de   : > { %2491 = vmatpush3.bf16.msra.mxu1 %v1053_v0 }
 0x3df   : > { %2496 = vmatprep.subr.bf16.mxu1 %v3524_v17  ;;  %2504 = vmatprep.subr.bf16.mxu0 %v1208_v15 }
 0x3e0   : > { %2505 = vmatpush3.bf16.msra.mxu0 %v1208_v15 }
 0x3e1   : > { %2493 = vmatmul.mubr.msk.bf16.vlgmr.msra.gmra.mrb[4].mxu1 %vm895_vm1, %v2806_v13  ;;  %2516 = vmatprep.subr.bf16.mxu0 %v3524_v17 }
 0x3e2   : > { %2497 = vmatpush3.bf16.msra.mxu1 %v1052_v1  ;;  %2500 = vmatprep.mubr.msk.bf16.mxu1 %vm3525_vm2, %v3524_v17 }
 0x3e3   : > { %2498 = vmatprep.subr.bf16.mxu1 %v3524_v17  ;;  %2507 = vmatmul.mubr.msk.bf16.vlgmr.msra.gmra.mrb[12].mxu0 %vm1334_vm4, %v2810_v16 }
 0x3e4   : > { %2517 = vmatpush3.bf16.msra.mxu0 %v2814_v18  ;;  %2524 = vmatprep.mubr.msk.bf16.mxu0 %vm3525_vm2, %v3524_v17 }
 0x3e5   : > { %2518 = vmatprep.subr.bf16.mxu0 %v3524_v17 }
 0x3e6   : > { %2499 = vmatpush3.bf16.msra.mxu1 %v1053_v0 }
 0x3e7   : > { %2510 = vmatprep.subr.bf16.mxu1 %v1208_v15 }
 0x3e8   : > { %2519 = vmatpush3.bf16.msra.mxu0 %v2815_v27 }
 0x3e9   : > { %2501 = vmatmul.mubr.msk.bf16.vlgmr.msra.gmra.mrb[8].mxu1 %vm895_vm1, %v2807_v22  ;;  %2520 = vmatprep.subr.bf16.mxu0 %v3524_v17  ;;  %v2381_v22 = vld [vmem:[#allocation31 + $0x1] ss:$0 sm:$0xff] }
 0x3ea   : > { %2511 = vmatpush3.bf16.msra.mxu1 %v1208_v15  ;;  %2512 = vmatprep.mubr.msk.bf16.mxu1 %vm1334_vm4, %v2809_v23 }
 0x3eb   : > { %2528 = vmatprep.subr.bf16.mxu1 %v3524_v17 }
 0x3ec   : > { %2521 = vmatpush3.bf16.msra.mxu0 %v2816_v28 }
 0x3ed   : > { %2522 = vmatprep.subr.bf16.mxu0 %v3524_v17 }
 0x3f0   : > { %2523 = vmatpush3.bf16.msra.mxu0 %v2818_v30 }
 0x3f1   : > { %2513 = vmatmul.mubr.msk.bf16.vlgmr.msra.gmra.mrb[12].mxu1 %vm1334_vm4, %v2811_v24  ;;  %2548 = vmatprep.subr.bf16.mxu0 %v2820_v32 }
 0x3f2   : > { %2529 = vmatpush3.bf16.msra.mxu1 %v2812_v25  ;;  %2532 = vmatprep.mubr.msk.bf16.mxu1 %vm3525_vm2, %v3524_v17 }
 0x3f3   : > { %2530 = vmatprep.subr.bf16.mxu1 %v3524_v17 }
 0x3f6   : > { %2531 = vmatpush3.bf16.msra.mxu1 %v2813_v26 }
 0x3f7   : > { %2536 = vmatprep.subr.bf16.mxu1 %v2817_v29 }
 0x3f9   : > { %2533 = vmatmul.mubr.msk.bf16.vlgmr.msra.gmra.mrb[16].mxu1 %vm895_vm1, %v4144_v21  ;;  %v2823_v21 = vld [vmem:[#allocation27 + $0x38] sm:$0xff]  }
 0x3fa   : > { %2537 = vmatpush3.bf16.msra.mxu1 %v2817_v29 }
 0x3fb   : > { %2538 = vmatprep.subr.bf16.mxu1 %v2819_v31 }
 0x3fe   : > { %2539 = vmatpush3.bf16.msra.mxu1 %v2819_v31 }
 0x3ff   : > { %2540 = vmatprep.subr.bf16.mxu1 %v2821_v33 }
 0x402   : > { %2541 = vmatpush3.bf16.msra.mxu1 %v2821_v33 }
 0x403   : > { %2542 = vmatprep.subr.bf16.mxu1 %v2823_v21 }
 0x406   : > { %2543 = vmatpush3.bf16.msra.mxu1 %v2823_v21 }
 0x4b4   : > { %v1255_v35 = vpop.f32.mrb[4].mxu1 }
 0x4b5   : > { %v2494_v36 = vpop.f32.mrb[5].mxu1 }
 0x4b6   : > { %v1258_v37 = vpop.f32.mrb[6].mxu1  ;;  %v2508_v17 = vpop.f32.mrb[12].mxu0 }
 0x4b7   : > { %v2495_v39 = vpop.f32.mrb[7].mxu1  ;;  %v1375_v40 = vpop.f32.mrb[13].mxu0 }
 0x4b8   : > { %v2509_v41 = vpop.f32.mrb[14].mxu0 }
 0x4b9   : > { %v1378_v42 = vpop.f32.mrb[15].mxu0 }
 0x4bc   : > { %v1304_v43 = vpop.f32.mrb[8].mxu1 }
 0x4bd   : > { %v1314_v44 = vsel %vm1313_vm5, %v1255_v35, %v1304_v43  ;;  %v2502_v45 = vpop.f32.mrb[9].mxu1 }
 0x4be   : > { %v1307_v46 = vpop.f32.mrb[10].mxu1 }
 0x4bf   : > { %v1315_v47 = vsel %vm1313_vm5, %v1258_v37, %v1307_v46  ;;  %v2503_v48 = vpop.f32.mrb[11].mxu1 }
 0x4c0   : > { %v1459_v49 = vpack.c.bf16 %v1315_v47, %v1314_v44  ;;  %v2374_v44 = vld [vmem:[#allocation30 + $0x1] ss:$0 sm:$0xff] }
 0x4c2   : > { %2525 = vmatmul.mubr.msk.bf16.vlgmr.msra.gmra.mrb[16].mxu0 %vm996_vm3, %v1459_v49 }
 0x4c3   : > { %2549 = vmatpush3.bf16.msra.mxu0 %v2820_v32  ;;  %2552 = vmatprep.mubr.msk.bf16.mxu0 %vm895_vm1, %v4122_v11  ;;  %v2368_v11 = vld [vmem:[#allocation31] ss:$0 sm:$0xff] }
 0x4c4   : > { %v2514_v51 = vpop.f32.mrb[12].mxu1  ;;  %2550 = vmatprep.subr.bf16.mxu0 %v2822_v50 }
 0x4c5   : > { %v1457_v52 = vsel %vm1313_vm5, %v2508_v17, %v2514_v51  ;;  %v1440_v53 = vpop.f32.mrb[13].mxu1 }
 0x4c6   : > { %v1455_v54 = vsel %vm1313_vm5, %v1375_v40, %v1440_v53  ;;  %v2515_v55 = vpop.f32.mrb[14].mxu1 }
 0x4c7   : > { %v1458_v56 = vsel %vm1313_vm5, %v2509_v41, %v2515_v55  ;;  %v1443_v57 = vpop.f32.mrb[15].mxu1  ;;  %2551 = vmatpush3.bf16.msra.mxu0 %v2822_v50 }
 0x4c8   : > { %v1668_v58 = vpack.c.bf16 %v1458_v56, %v1457_v52  ;;  %v1456_v59 = vsel %vm1313_vm5, %v1378_v42, %v1443_v57 }
 0x4c9   : > { %v1667_v60 = vpack.c.bf16 %v1456_v59, %v1455_v54 }
 0x4ca   : > { %2553 = vmatmul.mubr.msk.bf16.vlgmr.msra.gmra.mrb[20].mxu0 %vm895_vm1, %v4130_v14 }
 0x4cb   : > { %2544 = vmatprep.mubr.msk.bf16.mxu1 %vm996_vm3, %v1667_v60 }
 0x4cc   : > { %2545 = vmatmul.mubr.msk.bf16.vlgmr.msra.gmra.mrb[20].mxu1 %vm996_vm3, %v1668_v58  ;;  %v1600_v61 = vpop.f32.mrb[16].mxu1 }
 0x4cd   : > { %v1601_v62 = vadd.f32 %v2368_v11, %v1600_v61  ;;  %v2534_v63 = vpop.f32.mrb[17].mxu1 }
 0x4ce   : > { %v1603_v0 = vpop.f32.mrb[18].mxu1 }
 0x4cf   : > { %1623 = vrot.lane.b32.xlu0 %v1601_v62, %s3526_s0  ;;  %v1604_v1 = vadd.f32 %v2368_v11, %v1603_v0  ;;  %v2535_v2 = vpop.f32.mrb[19].mxu1 }
 0x4d3   : > { %1625 = vrot.lane.b32.xlu0 %v1604_v1, %s3526_s0 }
 0x541   : > { %v1624_v17 = vpop.permute.xlu0 %1623 }
 0x545   : > { %v1626_v40 = vpop.permute.xlu0 %1625 }
 0x595   : > { %v1536_v4 = vpop.f32.mrb[16].mxu0 }
 0x596   : > { %v4198_v5 = vadd.f32 %v2362_v3, %v1536_v4  ;;  %v2526_v14 = vpop.f32.mrb[17].mxu0 }
 0x597   : > { %v1539_v6 = vpop.f32.mrb[18].mxu0 }
 0x598   : > { %v1607_v7 = vadd.f32 %v1601_v62, %v4198_v5  ;;  %v4201_v13 = vadd.f32 %v2362_v3, %v1539_v6  ;;  %v2527_v15 = vpop.f32.mrb[19].mxu0 }
 0x59a   : > { %v2372_v16 = vmul.f32 -1.442695, %v1607_v7  ;;  %v1608_v18 = vadd.f32 %v1604_v1, %v4201_v13 }
 0x59c   : > { %2824 = vpow2.f32 %v2372_v16  ;;  %v2373_v23 = vmul.f32 -1.442695, %v1608_v18 }
 0x59d   : > { %v2554_v24 = vpop.f32.mrb[20].mxu0 }
 0x59e   : > { %2826 = vpow2.f32 %v2373_v23  ;;  %v1833_v25 = vadd.f32 %v2554_v24, %v2381_v22  ;;  %v1824_v26 = vpop.f32.mrb[21].mxu0 }
 0x59f   : > { %v1825_v27 = vadd.f32 %v2381_v22, %v1824_v26  ;;  %v2546_v28 = vpop.f32.mrb[20].mxu1  ;;  %v2555_v29 = vpop.f32.mrb[22].mxu0 }
 0x5a0   : > { %v1827_v30 = vpop.f32.mrb[23].mxu0  ;;  %1875 = vrot.lane.b32.xlu0 %v1833_v25, %s3526_s0  ;;  %v1750_v31 = vpop.f32.mrb[21].mxu1  ;;  %v1836_v36 = vadd.f32 %v2555_v29, %v2381_v22  ;;  %v1759_v46 = vadd.f32 %v2546_v28, %v2374_v44 }
 0x5a1   : > { %1871 = vrot.lane.b32.xlu1 %v1825_v27, %s3526_s0  ;;  %v2547_v32 = vpop.f32.mrb[22].mxu1  ;;  %v1828_v21 = vadd.f32 %v2381_v22, %v1827_v30  ;;  %v4216_v45 = vadd.f32 %v2374_v44, %v1750_v31 }
 0x5a2   : > { %v1753_v33 = vpop.f32.mrb[23].mxu1  ;;  %v1841_v49 = vadd.f32 %v1833_v25, %v1759_v46  ;;  %v1762_v51 = vadd.f32 %v2547_v32, %v2374_v44 }
 0x5a3   : > { %v1839_v47 = vadd.f32 %v1825_v27, %v4216_v45  ;;  %v4219_v48 = vadd.f32 %v2374_v44, %v1753_v33 }
 0x5a4   : > { %v2388_v53 = vmul.f32 -1.442695, %v1841_v49  ;;  %v1842_v54 = vadd.f32 %v1836_v36, %v1762_v51 }
 0x5a5   : > { %1873 = vrot.lane.b32.xlu1 %v1828_v21, %s3526_s0  ;;  %v2386_v50 = vmul.f32 -1.442695, %v1839_v47  ;;  %v1840_v52 = vadd.f32 %v1828_v21, %v4219_v48 }
 0x5a6   : > { %v2825_v34 = vpop.eup %2824  ;;  %v2389_v56 = vmul.f32 -1.442695, %v1842_v54 }
 0x5a7   : > { %v1615_v35 = vadd.f32 1.0, %v2825_v34  ;;  %v2387_v55 = vmul.f32 -1.442695, %v1840_v52 }
 0x5a8   : > { %v2827_v37 = vpop.eup %2826 }
 0x5a9   : > { %2828 = vrcp.f32 %v1615_v35  ;;  %v1616_v38 = vadd.f32 1.0, %v2827_v37  ;;  %1877 = vrot.lane.b32.xlu1 %v1836_v36, %s3526_s0 }
 0x5ab   : > { %2830 = vrcp.f32 %v1616_v38 }
 0x5ac   : > { %2832 = vpow2.f32 %v2386_v50 }
 0x5ad   : > { %2834 = vpow2.f32 %v2388_v53 }
 0x5ae   : > { %2836 = vpow2.f32 %v2387_v55 }
 0x5af   : > { %2838 = vpow2.f32 %v2389_v56 }
 0x5b3   : > { %v4208_v39 = vpop.eup %2828 }
 0x5b4   : > { %v1629_v41 = vmul.f32 %v4208_v39, %v1624_v17  ;;  %v1643_v38 = vsub.f32 1.0, %v4208_v39 }
 0x5b5   : > { %v4211_v42 = vpop.eup %2830 }
 0x5b6   : > { %v1630_v43 = vmul.f32 %v4211_v42, %v1626_v40  ;;  %1633 = vrot.lane.b32.xlu0 %v1629_v41, %s3526_s0  ;;  %v2833_v57 = vpop.eup %2832 }
 0x5b7   : > { %v2835_v58 = vpop.eup %2834  ;;  %v1855_v59 = vadd.f32 1.0, %v2833_v57 }
 0x5b8   : > { %1635 = vrot.lane.b32.xlu1 %v1630_v43, %s3526_s0  ;;  %v2837_v60 = vpop.eup %2836  ;;  %v1857_v11 = vadd.f32 1.0, %v2835_v58  ;;  %v1644_v43 = vsub.f32 1.0, %v4211_v42 }
 0x5b9   : > { %2840 = vrcp.f32 %v1855_v59  ;;  %v1856_v61 = vadd.f32 1.0, %v2837_v60  ;;  %v2839_v62 = vpop.eup %2838 }
 0x5ba   : > { %2842 = vrcp.f32 %v1857_v11  ;;  %v1858_v63 = vadd.f32 1.0, %v2839_v62 }
 0x5bb   : > { %2844 = vrcp.f32 %v1856_v61 }
 0x5bc   : > { %2846 = vrcp.f32 %v1858_v63 }
 0x5c3   : > { %v4222_v0 = vpop.eup %2840 }
 0x5c4   : > { %v4225_v4 = vpop.eup %2842  ;;  %v1911_v49 = vsub.f32 1.0, %v4222_v0 }
 0x5c5   : > { %v4228_v14 = vpop.eup %2844  ;;  %v1913_v53 = vsub.f32 1.0, %v4225_v4 }
 0x5c6   : > { %v4234_v16 = vpop.eup %2846  ;;  %v1912_v52 = vsub.f32 1.0, %v4228_v14 }
 0x5c7   : > { %v1914_v60 = vsub.f32 1.0, %v4234_v16 }
 0x612   : > { %v1876_v3 = vpop.permute.xlu0 %1875 }
 0x613   : > { %v1872_v1 = vpop.permute.xlu1 %1871  ;;  %v1885_v7 = vmul.f32 %v4225_v4, %v1876_v3 }
 0x614   : > { %v1883_v2 = vmul.f32 %v4222_v0, %v1872_v1 }
 0x616   : > { %1891 = vrot.lane.b32.xlu0 %v1883_v2, %s3526_s0 }
 0x617   : > { %v1874_v6 = vpop.permute.xlu1 %1873 }
 0x618   : > { %v1884_v15 = vmul.f32 %v4228_v14, %v1874_v6 }
 0x61a   : > { %1893 = vrot.lane.b32.xlu1 %v1884_v15, %s3526_s0  ;;  %1895 = vrot.lane.b32.xlu0 %v1885_v7, %s3526_s0 }
 0x61b   : > { %v1878_v18 = vpop.permute.xlu1 %1877 }
 0x61c   : > { %v1886_v22 = vmul.f32 %v4234_v16, %v1878_v18 }
 0x61e   : > { %1897 = vrot.lane.b32.xlu1 %v1886_v22, %s3526_s0  ;;  %1657 = vrot.lane.b32.xlu0 %v4133_v19, %s3527_s1  ;;  %s3364_s0 = scalar_lea.vmem %s4288_s16, 256 }
 0x61f   : > { %p3365_p2 = scmp.ne.s32.totalorder %s4288_s16, %s3364_s0 }
 0x621   : > { %p3366_p4 = pnand %p3365_p2, %p4502_p3 }
 0x622   : > { %1659 = vrot.lane.b32.xlu1 %v4135_v20, %s3527_s1  ;;  %1939 = vrot.lane.b32.xlu0 %v4114_v8, %s3527_s1 }
 0x623   : > { %p3367_p7 = pneg %p3366_p4 }
 0x626   : > { %1941 = vrot.lane.b32.xlu1 %v4116_v9, %s3527_s1 }
 0x628   : > { %v1634_v23 = vpop.permute.xlu0 %1633 }
 0x629   : > { %v1639_v24 = vadd.f32 %v1634_v23, %v4198_v5 }
 0x62a   : > { %v1636_v25 = vpop.permute.xlu1 %1635 }
 0x62b   : > { %2848 = vtanh.f32 %v1639_v24  ;;  %v1640_v26 = vadd.f32 %v1636_v25, %v4201_v13 }
 0x62d   : > { %2850 = vtanh.f32 %v1640_v26 }
 0x635   : > { %v2849_v27 = vpop.eup %2848 }
 0x636   : > { %1647 = vrot.lane.b32.xlu0 %v2849_v27, %s3528_s3 }
 0x637   : > { %v2851_v19 = vpop.eup %2850 }
 0x638   : > { %1649 = vrot.lane.b32.xlu1 %v2851_v19, %s3528_s3 }
 0x688   : > { %v1892_v20 = vpop.permute.xlu0 %1891 }
 0x689   : > { %v1903_v9 = vadd.f32 %v1892_v20, %v4216_v45 }
 0x68c   : > { %v1894_v8 = vpop.permute.xlu1 %1893  ;;  %v1896_v28 = vpop.permute.xlu0 %1895 }
 0x68d   : > { %v1905_v29 = vadd.f32 %v1896_v28, %v1759_v46  ;;  %v1904_v31 = vadd.f32 %v1894_v8, %v4219_v48 }
 0x68f   : > { %2852 = vtanh.f32 %v1905_v29 }
 0x690   : > { %v1898_v5 = vpop.permute.xlu1 %1897  ;;  %v1658_v21 = vpop.permute.xlu0 %1657 }
 0x691   : > { %v1906_v30 = vadd.f32 %v1898_v5, %v1762_v51  ;;  %v1663_v40 = vmul.f32 %v4208_v39, %v1658_v21 }
 0x693   : > { %2854 = vtanh.f32 %v1906_v30 }
 0x694   : > { %2856 = vtanh.f32 %v1903_v9  ;;  %v1660_v34 = vpop.permute.xlu1 %1659  ;;  %v1940_v36 = vpop.permute.xlu0 %1939 }
 0x695   : > { %2858 = vtanh.f32 %v1904_v31  ;;  %v1664_v45 = vmul.f32 %v4211_v42, %v1660_v34  ;;  %v1951_v39 = vmul.f32 %v4222_v0, %v1940_v36 }
 0x698   : > { %v1942_v37 = vpop.permute.xlu1 %1941 }
 0x699   : > { %v2853_v13 = vpop.eup %2852  ;;  %v1952_v55 = vmul.f32 %v4228_v14, %v1942_v37 }
 0x69a   : > { %1923 = vrot.lane.b32.xlu0 %v2853_v13, %s3528_s3 }
 0x69d   : > { %v2855_v32 = vpop.eup %2854 }
 0x69e   : > { %v2857_v33 = vpop.eup %2856  ;;  %1925 = vrot.lane.b32.xlu1 %v2855_v32, %s3528_s3 }
 0x69f   : > { %1919 = vrot.lane.b32.xlu0 %v2857_v33, %s3528_s3  ;;  %v2859_v35 = vpop.eup %2858 }
 0x6a2   : > { %1921 = vrot.lane.b32.xlu1 %v2859_v35, %s3528_s3 }
 0x6a3   : > { %1943 = vrot.lane.b32.xlu0 %v4118_v10, %s3527_s1 }
 0x6a6   : > { %1945 = vrot.lane.b32.xlu1 %v4124_v12, %s3527_s1  ;;  %s3529_s1 = smov [#allocation34]  }
 0x6a8   : > { %v1648_v17 = vpop.permute.xlu0 %1647 }
 0x6a9   : > { %v1653_v41 = vmul.f32 %v1648_v17, %v1643_v38 }
 0x6aa   : > { %v1650_v44 = vpop.permute.xlu1 %1649 }
 0x6ab   : > { %v1665_v46 = vadd.f32 %v1663_v40, %v1653_v41  ;;  %v1654_v47 = vmul.f32 %v1650_v44, %v1644_v43 }
 0x6ad   : > { %v1666_v48 = vadd.f32 %v1664_v45, %v1654_v47  ;;  %1961 = vrot.lane.b32.xlu0 %v1665_v46, %s3528_s3 }
 0x6af   : > { %1963 = vrot.lane.b32.xlu1 %v1666_v48, %s3528_s3 }
 0x70c   : > { %v1924_v10 = vpop.permute.xlu0 %1923 }
 0x70d   : > { %v1933_v58 = vmul.f32 %v1924_v10, %v1913_v53 }
 0x710   : > { %v1926_v12 = vpop.permute.xlu1 %1925 }
 0x711   : > { %v1920_v50 = vpop.permute.xlu0 %1919  ;;  %v1934_v63 = vmul.f32 %v1926_v12, %v1914_v60 }
 0x712   : > { %v1931_v51 = vmul.f32 %v1920_v50, %v1911_v49 }
 0x714   : > { %v1955_v42 = vadd.f32 %v1951_v39, %v1931_v51  ;;  %v1922_v54 = vpop.permute.xlu1 %1921 }
 0x715   : > { %v1932_v56 = vmul.f32 %v1922_v54, %v1912_v52  ;;  %v1944_v57 = vpop.permute.xlu0 %1943 }
 0x716   : > { %v1953_v59 = vmul.f32 %v4225_v4, %v1944_v57  ;;  %1973 = vrot.lane.b32.xlu0 %v1955_v42, %s3528_s3 }
 0x717   : > { %v1956_v11 = vadd.f32 %v1952_v55, %v1932_v56 }
 0x718   : > { %v1957_v61 = vadd.f32 %v1953_v59, %v1933_v58  ;;  %v1946_v62 = vpop.permute.xlu1 %1945 }
 0x719   : > { %v1954_v0 = vmul.f32 %v4234_v16, %v1946_v62  ;;  %1975 = vrot.lane.b32.xlu1 %v1956_v11, %s3528_s3 }
 0x71a   : > { %1977 = vrot.lane.b32.xlu0 %v1957_v61, %s3528_s3 }
 0x71b   : > { %v1958_v1 = vadd.f32 %v1954_v0, %v1934_v63 }
 0x71d   : > { %1979 = vrot.lane.b32.xlu1 %v1958_v1, %s3528_s3  ;;  %s3368_s3 = sshll.u32 %s3529_s1, 4  ;;  %s3369_s3 = int_to_ptr.vmem [resolvable:$false] %s3368_s3 }
 0x71e   : > { %s3370_s24 = scalar_lea.vmem %s3369_s3, 512  ;;  %p3371_p8 = scmp.lt.s32.totalorder %s4288_s16, %s3369_s3 }
 0x71f   : > { %v1962_v2 = vpop.permute.xlu0 %1961  ;;  %p3372_p12 = scmp.lt.s32.totalorder %s3370_s24, %s3364_s0 }
 0x720   : > { %1967 = vst.msk [vmem:[#allocation3] sm:$0xff] %vm895_vm1, %v1962_v2  ;;  %1989 = vst.msk [vmem:[%s4110_s21] sm:$0xff] %vm895_vm1, %v1962_v2 }
 0x721   : > { %v1964_v3 = vpop.permute.xlu1 %1963  ;;  %p3373_p5 = por %p3372_p12, %p3371_p8 }
 0x722   : > { %1968 = vst.msk [vmem:[#allocation3 + $0x8] sm:$0xff] %vm895_vm1, %v1964_v3  ;;  %1990 = vst.msk [vmem:[%s4110_s21 + $0x8] sm:$0xff] %vm895_vm1, %v1964_v3 }
 0x723   : > { %p3374_p6 = pnand %p3373_p5, %p3367_p7 }
 0x725   : > { %3377 = shalt.err (!%p3374_p6)
}
 0x726   : > { %s3378_s21 = scalar_lea.hbm %s4286_s2, 256  ;;  %s3382_s20 = scalar_lea.hbm %s4501_s22, 768 }
 0x727   : > { %p3379_p1 = scmp.ne.s32.totalorder %s4286_s2, %s3378_s21  ;;  %p3383_p11 = scmp.lt.u32.totalorder %s4286_s2, %s4501_s22 }
 0x728   : > { %p3384_p13 = scmp.lt.u32.totalorder %s3382_s20, %s3378_s21  ;;  %p3386_p2 = scmp.lt.u32.totalorder %s3378_s21, %s4286_s2 }
 0x729   : > { %p3380_p9 = pnand %p3379_p1, %p4502_p3 }
 0x72a   : > { %p3385_p0 = por %p3384_p13, %p3383_p11 }
 0x72b   : > { %p3381_p10 = pneg %p3380_p9 }
 0x72c   : > { %p3387_p4 = por %p3386_p2, %p3385_p0 }
 0x72e   : > { %p3388_p7 = pnand %p3387_p4, %p3381_p10 }
 0x730   : > { %3391 = shalt.err (!%p3388_p7)
}
 0x731   : > { %s3530_s0 = smov 128   ;;  %s3531_s24 = smov 8  }
 0x732   : > { %2629 = dma.vmem_to_hbm [thread:$0]  (%p4502_p3), %s4288_s16, 256, %s4286_s2, %s2001_s27, %s3530_s0, %s3530_s0, %s3531_s24  }
 0x733   : > { %s2398_s21 = sshll.u32 %s4498_s29, 9  ;;  %s2014_s25 = sshll.u32 %s4108_s17, 4  ;;  %s4336_s25 = int_to_ptr.vmem [resolvable:$true] %s2014_s25 }
 0x734   : > { %s4503_s27 = sld [smem:[#allocation65_spill]]  ;;  %s3392_s20 = scalar_lea.vmem %s4336_s25, 512 }
 0x735   : > { %p3393_p8 = scmp.ne.s32.totalorder %s4336_s25, %s3392_s20  ;;  %s3532_s1 = smov [#allocation33]  }
 0x736   : > { %s3396_s3 = sshll.u32 %s3532_s1, 4  ;;  %s3397_s3 = int_to_ptr.vmem [resolvable:$false] %s3396_s3 }
 0x737   : > { %p3394_p12 = pnand %p3393_p8, %p4502_p3  ;;  %p3399_p6 = scmp.lt.s32.totalorder %s4336_s25, %s3397_s3 }
 0x739   : > { %p3395_p5 = pneg %p3394_p12 }
 0x73a   : > { %s4334_s4 = scalar_lea.hbm %s4503_s27, %s2398_s21  ;;  %s3398_s21 = scalar_lea.vmem %s3397_s3, 1024 }
 0x73b   : > { %p3400_p1 = scmp.lt.s32.totalorder %s3398_s21, %s3392_s20 }
 0x73d   : > { %p3401_p9 = por %p3400_p1, %p3399_p6 }
 0x73f   : > { %p3402_p10 = pnand %p3401_p9, %p3395_p5 }
 0x788   : > { %v1974_v4 = vpop.permute.xlu0 %1973 }
 0x789   : > { %1985 = vst.msk [vmem:[#allocation2] sm:$0xff] %vm895_vm1, %v1974_v4  ;;  %1991 = vst.msk [vmem:[%s4108_s17] sm:$0xff] %vm895_vm1, %v1974_v4 }
 0x78b   : > { %v1976_v14 = vpop.permute.xlu1 %1975 }
 0x78c   : > { %1986 = vst.msk [vmem:[#allocation2 + $0x8] sm:$0xff] %vm895_vm1, %v1976_v14  ;;  %1992 = vst.msk [vmem:[%s4108_s17 + $0x8] sm:$0xff] %vm895_vm1, %v1976_v14  ;;  %v1978_v6 = vpop.permute.xlu0 %1977 }
 0x78d   : > { %1987 = vst.msk [vmem:[#allocation2 + $0x10] sm:$0xff] %vm895_vm1, %v1978_v6  ;;  %1993 = vst.msk [vmem:[%s4108_s17 + $0x10] sm:$0xff] %vm895_vm1, %v1978_v6 }
 0x78f   : > { %v1980_v7 = vpop.permute.xlu1 %1979 }
 0x790   : > { %1988 = vst.msk [vmem:[#allocation2 + $0x18] sm:$0xff] %vm895_vm1, %v1980_v7  ;;  %1994 = vst.msk [vmem:[%s4108_s17 + $0x18] sm:$0xff] %vm895_vm1, %v1980_v7 }
 0x791   : > { %3405 = shalt.err (!%p3402_p10)
}
 0x792   : > { %s3406_s17 = scalar_lea.hbm %s4334_s4, 512  ;;  %s3410_s1 = scalar_lea.hbm %s4503_s27, 1536 }
 0x793   : > { %p3407_p11 = scmp.ne.s32.totalorder %s4334_s4, %s3406_s17  ;;  %p3411_p2 = scmp.lt.u32.totalorder %s4334_s4, %s4503_s27 }
 0x794   : > { %p3412_p4 = scmp.lt.u32.totalorder %s3410_s1, %s3406_s17  ;;  %p3414_p8 = scmp.lt.u32.totalorder %s3406_s17, %s4334_s4 }
 0x795   : > { %p3408_p13 = pnand %p3407_p11, %p4502_p3 }
 0x796   : > { %p3413_p7 = por %p3412_p4, %p3411_p2 }
 0x797   : > { %p3409_p0 = pneg %p3408_p13 }
 0x798   : > { %p3415_p12 = por %p3414_p8, %p3413_p7 }
 0x79a   : > { %p3416_p5 = pnand %p3415_p12, %p3409_p0 }
 0x79c   : > { %3419 = shalt.err (!%p3416_p5)
}
 0x79d   : > { %s4504_s20 = scalar_lea.sflag [#allocation6], %s4104_s28 }
 0x79e   : > { %2628 = dma.vmem_to_hbm [thread:$0]  (%p4502_p3), %s4336_s25, 512, %s4334_s4, %s4504_s20, %s3530_s0, %s3530_s0, %s3531_s24  }
 0x79f PF: > { %s4505_s21 = sld [smem:[#allocation51_spill]]  ;;  %s4506_s29 = sld [smem:[#allocation48_spill]] }
 0x7a0   : > { %s4507_s16 = sld [smem:[#allocation56_spill]] }
 0x7a5   : > { %p2730_p6 = scmp.ge.s32.totalorder %s4505_s21, 2  ;;  %s2045_s2 = sand.u32 1, %s4506_s29  }
 0x7a6   : > { %p4508_p1 = scmp.ne.s32.totalorder %s4507_s16, 0  ;;  %s2046_s17 = scalar_lea.sflag [#allocation6], %s2045_s2 }
 0x7a8   : > { %p2688_p9 = pnand %p2730_p6, %p4508_p1 }
 0x7aa   : > { %3477 = dma.done.wait (!%p2688_p9), %s2046_s17, 512  }
 0x7ab   : > { %3479 = vsyncadd (!%p2688_p9), %s2046_s17, 4294966784  ;;  %s2055_s30 = scalar_lea.sflag [#allocation35], %s2045_s2 }
 0x7ac   : > { %3481 = dma.done.wait (!%p2688_p9), %s2055_s30, 256  }
 0x7ad   : > { %3483 = vsyncadd (!%p2688_p9), %s2055_s30, 4294967040  ;;  %s4509_s21 = sld [smem:[#allocation53_spill]]  ;;  %s4510_s0 = sld [smem:[#allocation49_spill]] }
 0x7ae   : > { %s4511_s30 = sld [smem:[#allocation50_spill]]  ;;  %s4512_s20 = sld [smem:[#allocation54_spill]] }
 0x7b3   : > { %p43_p3 = scmp.ge.s32.totalorder %s4509_s21, 5  }
 0x7b5   :  { %45 = sbr.rel (!%p43_p3) target bundleno = 25 (0x19), region = 222 }
 0x7bc   :  { %2060 = vsyncpa [#allocation5], 1 }
 0x7bd   :  { %2062 = vsyncpa [#allocation5 + $0x1], 1 }
 0x7be   :  { %2063 = vsyncpa [#allocation8], 1 }
 0x7bf   :  { %2064 = vsyncpa [#allocation11], 1 }
 0x7c0   :  { %2065 = vsyncpa [#allocation14], 1 }
 0x7c1   :  { %2066 = vsyncpa [#allocation17], 1 }
 0x7c2   :  { %2067 = vsyncpa [#allocation20], 1 }
 0x7c3   :  { %2068 = vsyncpa [#allocation23], 1 }
 0x7c4   :  { %2069 = vsyncpa [#allocation26], 1 }
 0x7c5   :  { %2070 = vsyncpa [#allocation29], 1 }
 0x7c6   :  { %2071 = vsyncpa [#allocation32], 1 }
 0x7c7   :  { %2072 = vsyncpa [#allocation6], 1 }
 0x7c8   :  { %2074 = vsyncpa [#allocation6 + $0x1], 1 }
 0x7c9   :  { %2075 = vsyncpa [#allocation35], 1 }
 0x7ca   :  { %2077 = vsyncpa [#allocation35 + $0x1], 1 }

</bundles_post_ra>
